<compile_context>
chip_gen: v7x
topology: tpu7x:2x2x1
jax: 0.10.0
libtpu: 0.0.40
codegen_flags: <defaults>
</compile_context>

<pallas_src>
import jax
import jax.numpy as jnp
from jax.experimental import pallas as pl
from jax.experimental.pallas import tpu as pltpu

HIDDEN = 256          # hidden_layer_size in the PyTorch module
LN_EPS = 1e-5         # nn.LayerNorm default eps

# Row layout of the packed small-vector array (shape (_PACK_ROWS, HIDDEN)).
_ROW_B1, _ROW_G1, _ROW_BE1 = 0, 1, 2
_ROW_B2, _ROW_G2, _ROW_BE2 = 3, 4, 5
_ROW_B3, _ROW_G3, _ROW_BE3 = 6, 7, 8
_ROW_W4, _ROW_B4 = 9, 10
_PACK_ROWS = 16       # padded to a multiple of 8 sublanes


def _round_up(x, m):
    return (x + m - 1) // m * m


def _layernorm(x, gamma, beta):
    # Single-pass statistics: mean = E[x], var = E[x^2] - mean^2 (biased, as in
    # nn.LayerNorm).  NOTE (review): single-pass variance can cancel badly when
    # |mean| >> std; fine here (post-matmul / post-LN activations), and it saves
    # one cross-lane reduce per layer.  Switch to two-pass if accuracy drifts.
    inv_n = 1.0 / x.shape[-1]
    s = jnp.sum(x, axis=-1, keepdims=True)
    s2 = jnp.sum(x * x, axis=-1, keepdims=True)
    mean = s * inv_n
    var = s2 * inv_n - mean * mean
    inv = jax.lax.rsqrt(var + LN_EPS)
    return (x - mean) * inv * gamma + beta


def ddpg_critic_kernel(sa_ref, w_aug_ref, w2h_ref, w3_ref, vec_ref, out_ref):
    H = HIDDEN

    # Load the packed small vectors once (single DMA), slice rows statically.
    vecs = vec_ref[...]                                    # (16, H) f32
    b1, g1, be1 = (vecs[_ROW_B1:_ROW_B1 + 1],
                   vecs[_ROW_G1:_ROW_G1 + 1],
                   vecs[_ROW_BE1:_ROW_BE1 + 1])
    b2, g2, be2 = (vecs[_ROW_B2:_ROW_B2 + 1],
                   vecs[_ROW_G2:_ROW_G2 + 1],
                   vecs[_ROW_BE2:_ROW_BE2 + 1])
    b3, g3, be3 = (vecs[_ROW_B3:_ROW_B3 + 1],
                   vecs[_ROW_G3:_ROW_G3 + 1],
                   vecs[_ROW_BE3:_ROW_BE3 + 1])
    w4_row = vecs[_ROW_W4:_ROW_W4 + 1]                     # (1, H)
    b4 = vecs[_ROW_B4:_ROW_B4 + 1, 0:1]                    # (1, 1)

    # Activations are cast to bf16 only at MXU inputs; elementwise math is f32.
    sa = sa_ref[...].astype(jnp.bfloat16)                  # (tile_b, S+A)

    # --- fused layer-1 / layer-2-action dot: one K=S+A, N=2H matmul ----------
    # W_aug = [[W1, 0], [0, W2a]]  ->  columns [:H] = state@W1, [H:] = action@W2a
    aug = jnp.dot(sa, w_aug_ref[...], preferred_element_type=jnp.float32)
    h = aug[:, :H] + b1                                    # layer-1 preactivation
    act_term = aug[:, H:]                                  # layer-2 action term

    # --- layer 1: ln1 -> relu -------------------------------------------------
    h = jnp.maximum(_layernorm(h, g1, be1), 0.0)

    # --- layer 2: lin2(cat(x, action)) = h@W2h + action@W2a -> ln2 -> relu ----
    h = (jnp.dot(h.astype(jnp.bfloat16), w2h_ref[...],
                 preferred_element_type=jnp.float32)
         + act_term + b2)
    h = jnp.maximum(_layernorm(h, g2, be2), 0.0)

    # --- layer 3: lin3 -> ln3 -> relu ------------------------------------------
    h = jnp.dot(h.astype(jnp.bfloat16), w3_ref[...],
                preferred_element_type=jnp.float32) + b3
    h = jnp.maximum(_layernorm(h, g3, be3), 0.0)

    # --- layer 4 (output_size == 1), emitted lane-major -----------------------
    # (1, H) x (tile_b, H) contracting both minor dims -> (1, tile_b), i.e. the
    # Q-values land directly in the lane-dense output row (no column->row
    # relayout, no masked lane-width-1 stores).
    q = jax.lax.dot_general(
        w4_row.astype(jnp.bfloat16), h.astype(jnp.bfloat16),
        dimension_numbers=(((1,), (1,)), ((), ())),
        preferred_element_type=jnp.float32)                # (1, tile_b)
    out_ref[...] = (q + b4).astype(out_ref.dtype)


def ddpg_critic_forward(state, action, params, *, tile_b=128):
    """state: (B, S) f32, action: (B, A) f32 -> (B, 1) f32."""
    B, S = state.shape
    A = action.shape[1]
    SA = S + A
    H = HIDDEN

    # Batch tiling.  tile_b=128 keeps f32 intermediates at ~32 vregs (review:
    # do not raise to 256).  Padded rows are zeros: LayerNorm on an all-zero row
    # gives var=0 -> rsqrt(eps) * (x-mean)=0, so no NaN/Inf; garbage rows are
    # sliced off below with [:B] -- intentional, do not remove eps or the slice.
    tile_b = min(tile_b, _round_up(B, 8))
    pB = _round_up(B, tile_b)
    if tile_b % 128 != 0 and tile_b != pB:
        # Keep the lane-dense output block (8,128)-aligned (last dim must be a
        # multiple of 128 or equal the full array dim).
        tile_b = pB
        pB = _round_up(B, tile_b)

    sa = jnp.concatenate([state, action], axis=-1)         # (B, S+A): one DMA
    if pB != B:
        sa = jnp.pad(sa, ((0, pB - B), (0, 0)))

    grid = (pB // tile_b,)

    out = pl.pallas_call(
        ddpg_critic_kernel,
        # Lane-dense output: one (1, tile_b) row per grid step into a (1, pB)
        # slab; reshaped to (B, 1) below.
        out_shape=jax.ShapeDtypeStruct((1, pB), jnp.float32),
        grid_spec=pltpu.PrefetchScalarGridSpec(
            num_scalar_prefetch=0,
            grid=grid,
            in_specs=[
                pl.BlockSpec((tile_b, SA), lambda i: (i, 0)),       # [state|action]
                pl.BlockSpec((SA, 2 * H), lambda i: (0, 0)),        # W_aug (bf16)
                pl.BlockSpec((H, H), lambda i: (0, 0)),             # w2h   (bf16)
                pl.BlockSpec((H, H), lambda i: (0, 0)),             # w3    (bf16)
                pl.BlockSpec((_PACK_ROWS, H), lambda i: (0, 0)),    # packed vecs
            ],
            out_specs=pl.BlockSpec((1, tile_b), lambda i: (0, i)),
        ),
        compiler_params=pltpu.CompilerParams(
            dimension_semantics=("parallel",)),  # megacore-split batch tiles
    )(sa,
      params["w_aug"], params["w2h"], params["w3"], params["vec_pack"])

    return out.reshape(pB, 1)[:B]


def init_params(key, state_size, action_size, output_size):
    """Deterministic synthetic init (shapes/init match the PyTorch module)."""
    assert output_size == 1, "packed layout assumes a scalar critic output"
    ks = jax.random.split(key, 8)
    H = HIDDEN

    def lin_init(k, fan_in, fan_out, w_scale=None):
        # torch.nn.Linear default: U(-1/sqrt(fan_in), 1/sqrt(fan_in))
        bound = 1.0 / float(fan_in) ** 0.5
        wb = w_scale if w_scale is not None else bound
        kw, kb = jax.random.split(k)
        w = jax.random.uniform(kw, (fan_in, fan_out), jnp.float32, -wb, wb)
        b = jax.random.uniform(kb, (fan_out,), jnp.float32, -bound, bound)
        return w, b

    w1, b1 = lin_init(ks[0], state_size, H)
    # lin2 takes concat([hidden, action]); split the weight along its input dim.
    w2_full, b2 = lin_init(ks[1], H + action_size, H)
    w2h, w2a = w2_full[:H, :], w2_full[H:, :]
    w3, b3 = lin_init(ks[2], H, H)
    # lin4.weight.data.uniform_(-0.01, 0.01); bias keeps default init.
    w4, b4 = lin_init(ks[3], H, output_size, w_scale=0.01)

    ones = jnp.ones((H,), jnp.float32)
    zeros = jnp.zeros((H,), jnp.float32)   # LayerNorm default affine params

    # bf16 MXU weights (half the HBM->VMEM traffic / VMEM footprint).
    w1_bf = w1.astype(jnp.bfloat16)
    w2h_bf = w2h.astype(jnp.bfloat16)
    w2a_bf = w2a.astype(jnp.bfloat16)
    w3_bf = w3.astype(jnp.bfloat16)

    # Block-diagonal augmented weight for the fused layer-1 / layer-2-action dot.
    SA = state_size + action_size
    w_aug = jnp.zeros((SA, 2 * H), jnp.bfloat16)
    w_aug = w_aug.at[:state_size, :H].set(w1_bf)
    w_aug = w_aug.at[state_size:, H:].set(w2a_bf)

    # Pack all (H,)-sized vectors + w4 row + b4 into one (16, H) f32 array.
    pack = jnp.zeros((_PACK_ROWS, H), jnp.float32)
    pack = pack.at[_ROW_B1].set(b1).at[_ROW_G1].set(ones).at[_ROW_BE1].set(zeros)
    pack = pack.at[_ROW_B2].set(b2).at[_ROW_G2].set(ones).at[_ROW_BE2].set(zeros)
    pack = pack.at[_ROW_B3].set(b3).at[_ROW_G3].set(ones).at[_ROW_BE3].set(zeros)
    pack = pack.at[_ROW_W4].set(w4[:, 0])
    pack = pack.at[_ROW_B4, 0].set(b4[0])

    return dict(
        # Kernel inputs.
        w_aug=w_aug, w2h=w2h_bf, w3=w3_bf, vec_pack=pack,
        # Copies kept only for the pure-JAX reference check (bf16-rounded
        # weights so the comparison isolates activation rounding).
        w1=w1_bf, w2a=w2a_bf,
        b1=b1, g1=ones, be1=zeros,
        b2=b2, g2=ones, be2=zeros,
        b3=b3, g3=ones, be3=zeros,
        w4=w4, b4=b4,
    )


def reference_forward(state, action, p):
    """Pure-JAX f32 reference (weights upcast from the same bf16 values)."""
    def ln(x, g, b):
        m = jnp.mean(x, -1, keepdims=True)
        v = jnp.mean((x - m) ** 2, -1, keepdims=True)
        return (x - m) * jax.lax.rsqrt(v + LN_EPS) * g + b

    w1 = p["w1"].astype(jnp.float32)
    w2 = jnp.concatenate([p["w2h"].astype(jnp.float32),
                          p["w2a"].astype(jnp.float32)], axis=0)
    w3 = p["w3"].astype(jnp.float32)

    x = jax.nn.relu(ln(state @ w1 + p["b1"], p["g1"], p["be1"]))
    x = jnp.concatenate([x, action], axis=-1)
    x = jax.nn.relu(ln(x @ w2 + p["b2"], p["g2"], p["be2"]))
    x = jax.nn.relu(ln(x @ w3 + p["b3"], p["g3"], p["be3"]))
    return x @ p["w4"] + p["b4"]


if __name__ == "__main__":
    key = jax.random.PRNGKey(0)
    k_state, k_action, k_params = jax.random.split(key, 3)

    # batch=512 with tile_b=128 -> grid=(4,): aligned lane-dense output blocks
    # and >=2 grid steps per TensorCore when v7x splits the "parallel" axis.
    batch = 512
    state_size = 16
    action_size = 4
    output_size = 1

    state = jax.random.normal(k_state, (batch, state_size), jnp.float32)
    action = jax.random.normal(k_action, (batch, action_size), jnp.float32)
    params = init_params(k_params, state_size, action_size, output_size)

    out = ddpg_critic_forward(state, action, params, tile_b=128)
    out = jax.block_until_ready(out)

    ref = reference_forward(state, action, params)
    assert out.shape == (batch, output_size)
    # bf16 MXU operands vs f32 reference -> loosened tolerance.
    assert jnp.allclose(out, ref, atol=2e-2, rtol=2e-2), "mismatch vs JAX reference"

    print("KERNEL_OK")
</pallas_src>

<mosaic_0001>
module attributes {stable_mosaic.version = 11 : i64} {
  func.func @ddpg_critic_kernel(%arg0: i32, %arg1: memref<128x20xf32, #tpu.memory_space<vmem>>, %arg2: memref<20x512xbf16, #tpu.memory_space<vmem>>, %arg3: memref<256x256xbf16, #tpu.memory_space<vmem>>, %arg4: memref<256x256xbf16, #tpu.memory_space<vmem>>, %arg5: memref<16x256xf32, #tpu.memory_space<vmem>>, %arg6: memref<1x128xf32, #tpu.memory_space<vmem>>) attributes {dimension_semantics = [#tpu.dimension_semantics<parallel>], iteration_bounds = array<i64: 4>, scalar_prefetch = 0 : i64, scratch_operands = 0 : i64, tpu.core_type = #tpu.core_type<tc>, window_params = [{transform_indices = @transform_0, window_bounds = array<i64: 128, 20>}, {pipeline_mode = #tpu.pipeline_mode<synchronous>, transform_indices = @transform_1, window_bounds = array<i64: 20, 512>}, {pipeline_mode = #tpu.pipeline_mode<synchronous>, transform_indices = @transform_2, window_bounds = array<i64: 256, 256>}, {pipeline_mode = #tpu.pipeline_mode<synchronous>, transform_indices = @transform_3, window_bounds = array<i64: 256, 256>}, {pipeline_mode = #tpu.pipeline_mode<synchronous>, transform_indices = @transform_4, window_bounds = array<i64: 16, 256>}, {transform_indices = @transform_5, window_bounds = array<i64: 1, 128>}]} {
    %c0 = arith.constant 0 : index
    %c0_0 = arith.constant 0 : index
    %0 = vector.load %arg5[%c0, %c0_0] : memref<16x256xf32, #tpu.memory_space<vmem>>, vector<16x256xf32>
    %1 = vector.extract_strided_slice %0 {offsets = [0, 0], sizes = [1, 256], strides = [1, 1]} : vector<16x256xf32> to vector<1x256xf32>
    %2 = vector.extract_strided_slice %0 {offsets = [1, 0], sizes = [1, 256], strides = [1, 1]} : vector<16x256xf32> to vector<1x256xf32>
    %3 = vector.extract_strided_slice %0 {offsets = [2, 0], sizes = [1, 256], strides = [1, 1]} : vector<16x256xf32> to vector<1x256xf32>
    %4 = vector.extract_strided_slice %0 {offsets = [3, 0], sizes = [1, 256], strides = [1, 1]} : vector<16x256xf32> to vector<1x256xf32>
    %5 = vector.extract_strided_slice %0 {offsets = [4, 0], sizes = [1, 256], strides = [1, 1]} : vector<16x256xf32> to vector<1x256xf32>
    %6 = vector.extract_strided_slice %0 {offsets = [5, 0], sizes = [1, 256], strides = [1, 1]} : vector<16x256xf32> to vector<1x256xf32>
    %7 = vector.extract_strided_slice %0 {offsets = [6, 0], sizes = [1, 256], strides = [1, 1]} : vector<16x256xf32> to vector<1x256xf32>
    %8 = vector.extract_strided_slice %0 {offsets = [7, 0], sizes = [1, 256], strides = [1, 1]} : vector<16x256xf32> to vector<1x256xf32>
    %9 = vector.extract_strided_slice %0 {offsets = [8, 0], sizes = [1, 256], strides = [1, 1]} : vector<16x256xf32> to vector<1x256xf32>
    %10 = vector.extract_strided_slice %0 {offsets = [9, 0], sizes = [1, 256], strides = [1, 1]} : vector<16x256xf32> to vector<1x256xf32>
    %11 = vector.extract_strided_slice %0 {offsets = [10, 0], sizes = [1, 1], strides = [1, 1]} : vector<16x256xf32> to vector<1x1xf32>
    %c0_1 = arith.constant 0 : index
    %c0_2 = arith.constant 0 : index
    %12 = vector.load %arg1[%c0_1, %c0_2] : memref<128x20xf32, #tpu.memory_space<vmem>>, vector<128x20xf32>
    %13 = arith.truncf %12 : vector<128x20xf32> to vector<128x20xbf16>
    %c0_3 = arith.constant 0 : index
    %c0_4 = arith.constant 0 : index
    %14 = vector.load %arg2[%c0_3, %c0_4] : memref<20x512xbf16, #tpu.memory_space<vmem>>, vector<20x512xbf16>
    %cst = arith.constant dense<0.000000e+00> : vector<128x512xf32>
    %15 = tpu.matmul %13, %14, %cst {dimension_numbers = #tpu.dot_dimension_numbers<[1], [0], [0], [1], [0, 0, 1, 1], [], []>} : vector<128x20xbf16>, vector<20x512xbf16>, vector<128x512xf32> -> vector<128x512xf32>
    %16 = vector.extract_strided_slice %15 {offsets = [0, 0], sizes = [128, 256], strides = [1, 1]} : vector<128x512xf32> to vector<128x256xf32>
    %17 = vector.broadcast %1 : vector<1x256xf32> to vector<128x256xf32>
    %18 = arith.addf %16, %17 : vector<128x256xf32>
    %19 = vector.extract_strided_slice %15 {offsets = [0, 256], sizes = [128, 256], strides = [1, 1]} : vector<128x512xf32> to vector<128x256xf32>
    %cst_5 = arith.constant dense<0.000000e+00> : vector<128xf32>
    %20 = vector.multi_reduction <add>, %18, %cst_5 [1] : vector<128x256xf32> to vector<128xf32>
    %21 = vector.shape_cast %20 : vector<128xf32> to vector<128x1xf32>
    %22 = arith.mulf %18, %18 : vector<128x256xf32>
    %cst_6 = arith.constant dense<0.000000e+00> : vector<128xf32>
    %23 = vector.multi_reduction <add>, %22, %cst_6 [1] : vector<128x256xf32> to vector<128xf32>
    %24 = vector.shape_cast %23 : vector<128xf32> to vector<128x1xf32>
    %cst_7 = arith.constant 3.906250e-03 : f32
    %25 = vector.broadcast %cst_7 : f32 to vector<128x1xf32>
    %26 = arith.mulf %21, %25 : vector<128x1xf32>
    %cst_8 = arith.constant 3.906250e-03 : f32
    %27 = vector.broadcast %cst_8 : f32 to vector<128x1xf32>
    %28 = arith.mulf %24, %27 : vector<128x1xf32>
    %29 = arith.mulf %26, %26 : vector<128x1xf32>
    %30 = arith.subf %28, %29 : vector<128x1xf32>
    %cst_9 = arith.constant 9.99999974E-6 : f32
    %31 = vector.broadcast %cst_9 : f32 to vector<128x1xf32>
    %32 = arith.addf %30, %31 : vector<128x1xf32>
    %33 = math.rsqrt %32 : vector<128x1xf32>
    %34 = vector.broadcast %26 : vector<128x1xf32> to vector<128x256xf32>
    %35 = arith.subf %18, %34 : vector<128x256xf32>
    %36 = vector.broadcast %33 : vector<128x1xf32> to vector<128x256xf32>
    %37 = arith.mulf %35, %36 : vector<128x256xf32>
    %38 = vector.broadcast %2 : vector<1x256xf32> to vector<128x256xf32>
    %39 = arith.mulf %37, %38 : vector<128x256xf32>
    %40 = vector.broadcast %3 : vector<1x256xf32> to vector<128x256xf32>
    %41 = arith.addf %39, %40 : vector<128x256xf32>
    %cst_10 = arith.constant 0.000000e+00 : f32
    %42 = vector.broadcast %cst_10 : f32 to vector<128x256xf32>
    %43 = arith.maximumf %41, %42 : vector<128x256xf32>
    %44 = arith.truncf %43 : vector<128x256xf32> to vector<128x256xbf16>
    %c0_11 = arith.constant 0 : index
    %c0_12 = arith.constant 0 : index
    %45 = vector.load %arg3[%c0_11, %c0_12] : memref<256x256xbf16, #tpu.memory_space<vmem>>, vector<256x256xbf16>
    %cst_13 = arith.constant dense<0.000000e+00> : vector<128x256xf32>
    %46 = tpu.matmul %44, %45, %cst_13 {dimension_numbers = #tpu.dot_dimension_numbers<[1], [0], [0], [1], [0, 0, 1, 1], [], []>} : vector<128x256xbf16>, vector<256x256xbf16>, vector<128x256xf32> -> vector<128x256xf32>
    %47 = arith.addf %46, %19 : vector<128x256xf32>
    %48 = vector.broadcast %4 : vector<1x256xf32> to vector<128x256xf32>
    %49 = arith.addf %47, %48 : vector<128x256xf32>
    %cst_14 = arith.constant dense<0.000000e+00> : vector<128xf32>
    %50 = vector.multi_reduction <add>, %49, %cst_14 [1] : vector<128x256xf32> to vector<128xf32>
    %51 = vector.shape_cast %50 : vector<128xf32> to vector<128x1xf32>
    %52 = arith.mulf %49, %49 : vector<128x256xf32>
    %cst_15 = arith.constant dense<0.000000e+00> : vector<128xf32>
    %53 = vector.multi_reduction <add>, %52, %cst_15 [1] : vector<128x256xf32> to vector<128xf32>
    %54 = vector.shape_cast %53 : vector<128xf32> to vector<128x1xf32>
    %cst_16 = arith.constant 3.906250e-03 : f32
    %55 = vector.broadcast %cst_16 : f32 to vector<128x1xf32>
    %56 = arith.mulf %51, %55 : vector<128x1xf32>
    %cst_17 = arith.constant 3.906250e-03 : f32
    %57 = vector.broadcast %cst_17 : f32 to vector<128x1xf32>
    %58 = arith.mulf %54, %57 : vector<128x1xf32>
    %59 = arith.mulf %56, %56 : vector<128x1xf32>
    %60 = arith.subf %58, %59 : vector<128x1xf32>
    %cst_18 = arith.constant 9.99999974E-6 : f32
    %61 = vector.broadcast %cst_18 : f32 to vector<128x1xf32>
    %62 = arith.addf %60, %61 : vector<128x1xf32>
    %63 = math.rsqrt %62 : vector<128x1xf32>
    %64 = vector.broadcast %56 : vector<128x1xf32> to vector<128x256xf32>
    %65 = arith.subf %49, %64 : vector<128x256xf32>
    %66 = vector.broadcast %63 : vector<128x1xf32> to vector<128x256xf32>
    %67 = arith.mulf %65, %66 : vector<128x256xf32>
    %68 = vector.broadcast %5 : vector<1x256xf32> to vector<128x256xf32>
    %69 = arith.mulf %67, %68 : vector<128x256xf32>
    %70 = vector.broadcast %6 : vector<1x256xf32> to vector<128x256xf32>
    %71 = arith.addf %69, %70 : vector<128x256xf32>
    %cst_19 = arith.constant 0.000000e+00 : f32
    %72 = vector.broadcast %cst_19 : f32 to vector<128x256xf32>
    %73 = arith.maximumf %71, %72 : vector<128x256xf32>
    %74 = arith.truncf %73 : vector<128x256xf32> to vector<128x256xbf16>
    %c0_20 = arith.constant 0 : index
    %c0_21 = arith.constant 0 : index
    %75 = vector.load %arg4[%c0_20, %c0_21] : memref<256x256xbf16, #tpu.memory_space<vmem>>, vector<256x256xbf16>
    %cst_22 = arith.constant dense<0.000000e+00> : vector<128x256xf32>
    %76 = tpu.matmul %74, %75, %cst_22 {dimension_numbers = #tpu.dot_dimension_numbers<[1], [0], [0], [1], [0, 0, 1, 1], [], []>} : vector<128x256xbf16>, vector<256x256xbf16>, vector<128x256xf32> -> vector<128x256xf32>
    %77 = vector.broadcast %7 : vector<1x256xf32> to vector<128x256xf32>
    %78 = arith.addf %76, %77 : vector<128x256xf32>
    %cst_23 = arith.constant dense<0.000000e+00> : vector<128xf32>
    %79 = vector.multi_reduction <add>, %78, %cst_23 [1] : vector<128x256xf32> to vector<128xf32>
    %80 = vector.shape_cast %79 : vector<128xf32> to vector<128x1xf32>
    %81 = arith.mulf %78, %78 : vector<128x256xf32>
    %cst_24 = arith.constant dense<0.000000e+00> : vector<128xf32>
    %82 = vector.multi_reduction <add>, %81, %cst_24 [1] : vector<128x256xf32> to vector<128xf32>
    %83 = vector.shape_cast %82 : vector<128xf32> to vector<128x1xf32>
    %cst_25 = arith.constant 3.906250e-03 : f32
    %84 = vector.broadcast %cst_25 : f32 to vector<128x1xf32>
    %85 = arith.mulf %80, %84 : vector<128x1xf32>
    %cst_26 = arith.constant 3.906250e-03 : f32
    %86 = vector.broadcast %cst_26 : f32 to vector<128x1xf32>
    %87 = arith.mulf %83, %86 : vector<128x1xf32>
    %88 = arith.mulf %85, %85 : vector<128x1xf32>
    %89 = arith.subf %87, %88 : vector<128x1xf32>
    %cst_27 = arith.constant 9.99999974E-6 : f32
    %90 = vector.broadcast %cst_27 : f32 to vector<128x1xf32>
    %91 = arith.addf %89, %90 : vector<128x1xf32>
    %92 = math.rsqrt %91 : vector<128x1xf32>
    %93 = vector.broadcast %85 : vector<128x1xf32> to vector<128x256xf32>
    %94 = arith.subf %78, %93 : vector<128x256xf32>
    %95 = vector.broadcast %92 : vector<128x1xf32> to vector<128x256xf32>
    %96 = arith.mulf %94, %95 : vector<128x256xf32>
    %97 = vector.broadcast %8 : vector<1x256xf32> to vector<128x256xf32>
    %98 = arith.mulf %96, %97 : vector<128x256xf32>
    %99 = vector.broadcast %9 : vector<1x256xf32> to vector<128x256xf32>
    %100 = arith.addf %98, %99 : vector<128x256xf32>
    %cst_28 = arith.constant 0.000000e+00 : f32
    %101 = vector.broadcast %cst_28 : f32 to vector<128x256xf32>
    %102 = arith.maximumf %100, %101 : vector<128x256xf32>
    %103 = arith.truncf %10 : vector<1x256xf32> to vector<1x256xbf16>
    %104 = arith.truncf %102 : vector<128x256xf32> to vector<128x256xbf16>
    %cst_29 = arith.constant dense<0.000000e+00> : vector<1x128xf32>
    %105 = tpu.matmul %103, %104, %cst_29 {dimension_numbers = #tpu.dot_dimension_numbers<[1], [1], [0], [0], [0, 0, 1, 0], [], []>} : vector<1x256xbf16>, vector<128x256xbf16>, vector<1x128xf32> -> vector<1x128xf32>
    %106 = vector.broadcast %11 : vector<1x1xf32> to vector<1x128xf32>
    %107 = arith.addf %105, %106 : vector<1x128xf32>
    %c0_30 = arith.constant 0 : index
    %c0_31 = arith.constant 0 : index
    %108 = vector.load %arg6[%c0_30, %c0_31] : memref<1x128xf32, #tpu.memory_space<vmem>>, vector<1x128xf32>
    tpu.vector_store %arg6[%c0_30, %c0_31], %107 {strides = array<i32>} : memref<1x128xf32, #tpu.memory_space<vmem>>, vector<1x128xf32>,
    return
  }
  func.func @transform_0(%arg0: i32) -> (i32, i32) {
    %c0_i32 = arith.constant 0 : i32
    %c0_i32_0 = arith.constant 0 : i32
    return %arg0, %c0_i32 : i32, i32
  }
  func.func @transform_1(%arg0: i32) -> (i32, i32) {
    %c0_i32 = arith.constant 0 : i32
    %c0_i32_0 = arith.constant 0 : i32
    %c0_i32_1 = arith.constant 0 : i32
    return %c0_i32, %c0_i32_0 : i32, i32
  }
  func.func @transform_2(%arg0: i32) -> (i32, i32) {
    %c0_i32 = arith.constant 0 : i32
    %c0_i32_0 = arith.constant 0 : i32
    %c0_i32_1 = arith.constant 0 : i32
    return %c0_i32, %c0_i32_0 : i32, i32
  }
  func.func @transform_3(%arg0: i32) -> (i32, i32) {
    %c0_i32 = arith.constant 0 : i32
    %c0_i32_0 = arith.constant 0 : i32
    %c0_i32_1 = arith.constant 0 : i32
    return %c0_i32, %c0_i32_0 : i32, i32
  }
  func.func @transform_4(%arg0: i32) -> (i32, i32) {
    %c0_i32 = arith.constant 0 : i32
    %c0_i32_0 = arith.constant 0 : i32
    %c0_i32_1 = arith.constant 0 : i32
    return %c0_i32, %c0_i32_0 : i32, i32
  }
  func.func @transform_5(%arg0: i32) -> (i32, i32) {
    %c0_i32 = arith.constant 0 : i32
    %c0_i32_0 = arith.constant 0 : i32
    return %c0_i32, %arg0 : i32, i32
  }
}

</mosaic_0001>

<bundles_post_ra>
// kernel: tpu_custom_call.1
= control target key start
LH: loop header
LB: loop body
LE: loop exit
PB: predicated region body
PF: predicated region fallthrough
CT: control target
= control target key end

     0   :  { %10 = vsyncpa [#allocation3], 0  ;;  %s4735_s0 = inlined_call_operand.vmem [shape: f32[512,20], index: 0, kind: input, shape index: {}]   ;;  %s4736_s1 = inlined_call_operand.vmem [shape: bf16[20,512], index: 1, kind: input, shape index: {}]   ;;  %s4737_s2 = inlined_call_operand.vmem [shape: bf16[256,256], index: 2, kind: input, shape index: {}]   ;;  %s4738_s3 = inlined_call_operand.vmem [shape: bf16[256,256], index: 3, kind: input, shape index: {}]   ;;  %s4739_s4 = inlined_call_operand.vmem [shape: f32[16,256], index: 4, kind: input, shape index: {}]   ;;  %s4740_s5 = inlined_call_operand.hbm [shape: f32[1,512], index: 5, kind: output, shape index: {}]  }
   0x1   :  { %12 = vsyncpa [#allocation3 + $0x1], 0  ;;  %s3098_s18 = smov 0   ;;  %s3100_s19 = smov 0  }
   0x2   :  { %s3102_s20 = smov 0   ;;  %s3104_s21 = smov 0  }
   0x3 LB: > { %s2623_s22 = sadd.s32 4294967295, %s3064_s21   ;;  %s2624_s23 = sadd.s32 4294967294, %s3064_s21   ;;  %s3064_s21 = sphi %s3104_s21, %s4753_s21   ;;  %s3060_s20 = sphi %s3102_s20, %s4752_s20   ;;  %s3056_s19 = sphi %s3100_s19, %s4751_s19   ;;  %s3052_s18 = sphi %s3098_s18, %s4750_s18  }
   0x4   : > { %s3121_s24 = sadd.s32 1, %s3064_s21   ;;  %s135_s25 = sadd.s32 1, %s3060_s20 }
   0x5   : > { %s132_s26 = ssub.s32 %s3064_s21, %s3121_s24  ;;  %p145_p0 = scmp.ne.s32.totalorder %s3060_s20, %s3056_s19 }
   0x6   : > { %p133_p1 = scmp.eq.s32.totalorder %s132_s26, 0  ;;  %p146_p2 = scmp.eq.s32.totalorder %s2623_s22, 3 }
   0x7   : > { %p151_p3 = scmp.ne.s32.totalorder %s3056_s19, %s3052_s18  ;;  %p152_p4 = scmp.eq.s32.totalorder %s2624_s23, 3 }
   0x8   : > { %s3131_s27 = scalar_select %p133_p1, %s3060_s20, %s135_s25  }
   0x9   : > { %p3133_p5 = por %p146_p2, %p145_p0  ;;  %p3137_p6 = por %p152_p4, %p151_p3 }
   0xa   : > { %p2627_p7 = scmp.ge.s32.totalorder %s3064_s21, 1  ;;  %p191_p8 = scmp.lt.s32.totalorder %s3064_s21, 5 }
   0xc   : > { %p192_p9 = pnand %p2627_p7, %p191_p8 }
   0xe   : > { %195 = sbr.rel (%p192_p9) target bundleno = 1510 (0x5e6), region = 40 }
  0x15   : > { %v2796_v0 = vld [vmem:[%s4736_s1 + $0x4] ss:$16 sps:$4 sm:$0xff]   ;;  %v2798_v1 = vld [vmem:[%s4736_s1] ss:$16 sps:$4 sm:$0xff]   ;;  %vm314_vm0 = vcmask 1041408   ;;  %v3066_v3 = vmov 0   ;;  %v553_v53 = vlaneseq }
  0x16   : > { %v257_v2 = vld [vmem:[%s4736_s1 + $0x20] sm:$0x33]  ;;  %359 = vmatprep.mubr.bf16.mxu0 %v3066_v3  ;;  %s3153_s11 = sshll.u32 %s2623_s22, 4  ;;  %472 = vmatprep.mubr.bf16.mxu1 %v3066_v3  ;;  %vm289_vm1 = vcmask 162816   ;;  %v2801_v31 = vld [vmem:[%s4736_s1 + $0xc] ss:$16 sps:$4 sm:$0xff]  }
  0x17   : > { %327 = vmatprep.subr.bf16.mxu0 %v2796_v0  ;;  %v2635_v4 = vcombine.high %v257_v2, %v257_v2  ;;  %v2634_v5 = vcombine.low %v257_v2, %v257_v2  ;;  %p219_p10 = scmp.lt.s32.totalorder %s3153_s11, 63  ;;  %2795 = vset.pattern.permute.xlu0 %v3066_v3  ;;  %v2803_v32 = vld [vmem:[%s4736_s1 + $0x8] ss:$16 sps:$4 sm:$0xff]   ;;  %v2808_v37 = vld [vmem:[%s4737_s2 + $0x4] ss:$8 sps:$4 sm:$0xff]   ;;  %v3283_v54 = vshrl.u32 %v553_v53, 7 }
  0x18   : > { %328 = vmatpush1.bf16.msra.mxu0 %v2798_v1  ;;  %v258_v33 = vld [vmem:[%s4736_s1 + $0x28] sm:$0x33]  ;;  %440 = vmatprep.subr.bf16.mxu1 %v2801_v31  ;;  %v2811_v39 = vld [vmem:[%s4737_s2 + $0x14] ss:$8 sps:$4 sm:$0xff]   ;;  %v2809_v40 = vld [vmem:[%s4737_s2 + $0x10] ss:$8 sps:$4 sm:$0xff]  }
  0x19   : > { %2638 = vmatprep.subr.msk.bf16.mxu0 %vm314_vm0, %v2635_v4  ;;  %v316_v6 = vsel %vm314_vm0, %v2634_v5, 0  ;;  %s220_s12 = scalar_select %p219_p10, %s3153_s11, 63  ;;  %v2637_v34 = vcombine.high %v258_v33, %v258_v33  ;;  %v2636_v35 = vcombine.low %v258_v33, %v258_v33  ;;  %441 = vmatpush1.bf16.msra.mxu1 %v2803_v32  ;;  %v2806_v38 = vld [vmem:[%s4737_s2] ss:$8 sps:$4 sm:$0xff]   ;;  %v2814_v41 = vld [vmem:[%s4737_s2 + $0x24] ss:$8 sps:$4 sm:$0xff]  }
  0x1a   : > { %v2812_v42 = vld [vmem:[%s4737_s2 + $0x20] ss:$8 sps:$4 sm:$0xff]   ;;  %v2817_v43 = vld [vmem:[%s4737_s2 + $0x34] ss:$8 sps:$4 sm:$0xff]   ;;  %v2815_v44 = vld [vmem:[%s4737_s2 + $0x30] ss:$8 sps:$4 sm:$0xff]  }
  0x1b   : > { %s2629_s13 = sshll.u32 %s220_s12, 3  ;;  %2647 = vmatprep.subr.msk.bf16.mxu1 %vm314_vm0, %v2637_v34  ;;  %v322_v36 = vsel %vm314_vm0, %v2636_v35, 0  ;;  %v2820_v45 = vld [vmem:[%s4737_s2 + $0x44] ss:$8 sps:$4 sm:$0xff]   ;;  %v2818_v46 = vld [vmem:[%s4737_s2 + $0x40] ss:$8 sps:$4 sm:$0xff]   ;;  %s4693_s12 = scalar_lea.hbm %s4740_s5, %s3153_s11 }
  0x1c   : > { %330 = vmatpush1.bf16.msra.mxu0 %v316_v6  ;;  %s3164_s16 = scalar_lea.vmem %s4735_s0, %s2629_s13  ;;  %v2823_v47 = vld [vmem:[%s4737_s2 + $0x54] ss:$8 sps:$4 sm:$0xff]   ;;  %v2821_v48 = vld [vmem:[%s4737_s2 + $0x50] ss:$8 sps:$4 sm:$0xff]   ;;  %v2826_v49 = vld [vmem:[%s4737_s2 + $0x64] ss:$8 sps:$4 sm:$0xff]  }
  0x1d   : > { %v229_v7 = vld [vmem:[%s3164_s16] sm:$0xff]  ;;  %v230_v8 = vld [vmem:[%s3164_s16 + $0x8] sm:$0xff]  ;;  %v231_v10 = vld [vmem:[%s3164_s16 + $0x10] sm:$0xff]  ;;  %443 = vmatpush1.bf16.msra.mxu1 %v322_v36  ;;  %v3289_v55 = vsub.s32 0, %v3283_v54  ;;  %s216_s6 = sand.u32 1, %s3056_s19   ;;  %s3067_s15 = smov [#allocation2]  }
  0x1e   : > { %v245_v9 = vpack.c.bf16 %v230_v8, %v229_v7  ;;  %v232_v11 = vld [vmem:[%s3164_s16 + $0x18] sm:$0xff]  ;;  %v233_v13 = vld [vmem:[%s3164_s16 + $0x20] sm:$0xff]  ;;  %v234_v14 = vld [vmem:[%s3164_s16 + $0x28] sm:$0xff]  ;;  %1201 = vmatprep.subr.bf16.mxu1 %v2808_v37  ;;  %s217_s7 = scalar_lea.vmem [#allocation2], %s216_s6  ;;  %s2557_s13 = scalar_lea.sflag [#allocation3], %s216_s6 }
  0x1f   : > { %v246_v12 = vpack.c.bf16 %v232_v11, %v231_v10  ;;  %v247_v15 = vpack.c.bf16 %v234_v14, %v233_v13  ;;  %v235_v16 = vld [vmem:[%s3164_s16 + $0x30] sm:$0xff]  ;;  %v236_v17 = vld [vmem:[%s3164_s16 + $0x38] sm:$0xff]  ;;  %v237_v19 = vld [vmem:[%s3164_s16 + $0x40] sm:$0xff]  ;;  %4745 = vst [vmem:[#allocation5_spill] sm:$0xff] %v3289_v55  ;;  %s2569_s8 = sshll.u32 %s217_s7, 4  ;;  %s4695_s8 = int_to_ptr.vmem [resolvable:$true] %s2569_s8 }
  0x20   : > { %2639 = vmatmul.mubr.msk.bf16.vlgmr.msra.gmra.mrb[0].mxu0 %vm289_vm1, %v245_v9  ;;  %v3180_v18 = vpack.c.bf16 %v236_v17, %v235_v16  ;;  %v238_v20 = vld [vmem:[%s3164_s16 + $0x48] sm:$0xff]  ;;  %v239_v22 = vld [vmem:[%s3164_s16 + $0x50] sm:$0xff]  ;;  %v240_v23 = vld [vmem:[%s3164_s16 + $0x58] sm:$0xff]  ;;  %2648 = vmatmul.mubr.msk.bf16.vlgmr.msra.gmra.mrb[0].mxu1 %vm289_vm1, %v245_v9  ;;  %s3002_s14 = scalar_lea.vmem %s4695_s8, 16 }
  0x21   : > { %369 = vmatprep.mubr.bf16.mxu0 %v3066_v3  ;;  %v3187_v21 = vpack.c.bf16 %v238_v20, %v237_v19  ;;  %v3194_v24 = vpack.c.bf16 %v240_v23, %v239_v22  ;;  %v241_v25 = vld [vmem:[%s3164_s16 + $0x60] sm:$0xff]  ;;  %v242_v26 = vld [vmem:[%s3164_s16 + $0x68] sm:$0xff]  ;;  %v243_v28 = vld [vmem:[%s3164_s16 + $0x70] sm:$0xff]  ;;  %1202 = vmatpush1.bf16.msra.mxu1 %v2806_v38  ;;  %p3003_p11 = scmp.ne.s32.totalorder %s4695_s8, %s3002_s14 }
  0x22   : > { %v3201_v27 = vpack.c.bf16 %v242_v26, %v241_v25  ;;  %v244_v29 = vld [vmem:[%s3164_s16 + $0x78] sm:$0xff]  ;;  %482 = vmatprep.mubr.bf16.mxu1 %v3066_v3  ;;  %1203 = vmatprep.subr.bf16.mxu1 %v2811_v39  ;;  %v2824_v50 = vld [vmem:[%s4737_s2 + $0x60] ss:$8 sps:$4 sm:$0xff]   ;;  %v2832_v39 = vld [vmem:[%s4737_s2 + $0x84] ss:$8 sps:$4 sm:$0xff]   ;;  %s3006_s16 = sshll.u32 %s3067_s15, 4  ;;  %s3007_s16 = int_to_ptr.vmem [resolvable:$false] %s3006_s16 }
  0x23   : > { %v3208_v30 = vpack.c.bf16 %v244_v29, %v243_v28  ;;  %v2829_v51 = vld [vmem:[%s4737_s2 + $0x74] ss:$8 sps:$4 sm:$0xff]   ;;  %v2827_v52 = vld [vmem:[%s4737_s2 + $0x70] ss:$8 sps:$4 sm:$0xff]   ;;  %v3294_v56 = vld [vmem:[%s4739_s4] sm:$0xff]  ;;  %p3004_p12 = pnand %p3003_p11, %p3133_p5  ;;  %s3008_s17 = scalar_lea.vmem %s3007_s16, 32 }
  0x24   : > { %v3299_v57 = vld [vmem:[%s4739_s4 + $0x8] sm:$0xff]  ;;  %v3303_v58 = vrot.slane %v3294_v56, %v3289_v55  ;;  %p3009_p0 = scmp.lt.s32.totalorder %s4695_s8, %s3007_s16  ;;  %p3010_p1 = scmp.lt.s32.totalorder %s3008_s17, %s3002_s14 }
  0x25   : > { %1204 = vmatpush1.bf16.msra.mxu1 %v2809_v40  ;;  %v3307_v59 = vrot.slane %v3299_v57, %v3289_v55  ;;  %v2830_v40 = vld [vmem:[%s4737_s2 + $0x80] ss:$8 sps:$4 sm:$0xff]   ;;  %p3005_p13 = pneg %p3004_p12 }
  0x26   : > { %1205 = vmatprep.subr.bf16.mxu1 %v2814_v41  ;;  %p3011_p2 = por %p3010_p1, %p3009_p0 }
  0x28   : > { %2640 = vmatmul.mubr.msk.bf16.gmra.mrb[4].mxu0 %vm289_vm1, %v246_v12  ;;  %2649 = vmatmul.mubr.msk.bf16.gmra.mrb[4].mxu1 %vm289_vm1, %v246_v12  ;;  %p3012_p3 = pnand %p3011_p2, %p3005_p13 }
  0x29   : > { %379 = vmatprep.mubr.bf16.mxu0 %v3066_v3  ;;  %1206 = vmatpush1.bf16.msra.mxu1 %v2812_v42 }
  0x2a   : > { %492 = vmatprep.mubr.bf16.mxu1 %v3066_v3  ;;  %1207 = vmatprep.subr.bf16.mxu1 %v2817_v43 }
  0x2d   : > { %1208 = vmatpush1.bf16.msra.mxu1 %v2815_v44 }
  0x2e   : > { %1209 = vmatprep.subr.bf16.mxu1 %v2820_v45 }
  0x30   : > { %2641 = vmatmul.mubr.msk.bf16.gmra.mrb[8].mxu0 %vm289_vm1, %v247_v15  ;;  %2650 = vmatmul.mubr.msk.bf16.gmra.mrb[8].mxu1 %vm289_vm1, %v247_v15 }
  0x31   : > { %389 = vmatprep.mubr.bf16.mxu0 %v3066_v3  ;;  %1210 = vmatpush1.bf16.msra.mxu1 %v2818_v46 }
  0x32   : > { %502 = vmatprep.mubr.bf16.mxu1 %v3066_v3  ;;  %1211 = vmatprep.subr.bf16.mxu1 %v2823_v47 }
  0x35   : > { %1212 = vmatpush1.bf16.msra.mxu1 %v2821_v48  ;;  %v2835_v48 = vld [vmem:[%s4737_s2 + $0x94] ss:$8 sps:$4 sm:$0xff]  }
  0x36   : > { %1213 = vmatprep.subr.bf16.mxu1 %v2826_v49 }
  0x38   : > { %2642 = vmatmul.mubr.msk.bf16.gmra.mrb[12].mxu0 %vm289_vm1, %v3180_v18  ;;  %2651 = vmatmul.mubr.msk.bf16.gmra.mrb[12].mxu1 %vm289_vm1, %v3180_v18 }
  0x39   : > { %399 = vmatprep.mubr.bf16.mxu0 %v3066_v3  ;;  %1214 = vmatpush1.bf16.msra.mxu1 %v2824_v50 }
  0x3a   : > { %512 = vmatprep.mubr.bf16.mxu1 %v3066_v3  ;;  %1215 = vmatprep.subr.bf16.mxu1 %v2829_v51 }
  0x3d   : > { %1216 = vmatpush1.bf16.msra.mxu1 %v2827_v52  ;;  %v2833_v52 = vld [vmem:[%s4737_s2 + $0x90] ss:$8 sps:$4 sm:$0xff]  }
  0x3e   : > { %1217 = vmatprep.subr.bf16.mxu1 %v2832_v39 }
  0x40   : > { %2643 = vmatmul.mubr.msk.bf16.gmra.mrb[16].mxu0 %vm289_vm1, %v3187_v21  ;;  %2652 = vmatmul.mubr.msk.bf16.gmra.mrb[16].mxu1 %vm289_vm1, %v3187_v21 }
  0x41   : > { %409 = vmatprep.mubr.bf16.mxu0 %v3066_v3  ;;  %522 = vmatprep.mubr.bf16.mxu1 %v3066_v3 }
  0x42   : > { %1218 = vmatpush1.bf16.msra.mxu1 %v2830_v40 }
  0x43   : > { %1219 = vmatprep.subr.bf16.mxu1 %v2835_v48 }
  0x46   : > { %1220 = vmatpush1.bf16.msra.mxu1 %v2833_v52 }
  0x48   : > { %2644 = vmatmul.mubr.msk.bf16.gmra.mrb[20].mxu0 %vm289_vm1, %v3194_v24  ;;  %2653 = vmatmul.mubr.msk.bf16.gmra.mrb[20].mxu1 %vm289_vm1, %v3194_v24 }
  0x49   : > { %419 = vmatprep.mubr.bf16.mxu0 %v3066_v3  ;;  %532 = vmatprep.mubr.bf16.mxu1 %v3066_v3 }
  0x50   : > { %2645 = vmatmul.mubr.msk.bf16.gmra.mrb[24].mxu0 %vm289_vm1, %v3201_v27  ;;  %2654 = vmatmul.mubr.msk.bf16.gmra.mrb[24].mxu1 %vm289_vm1, %v3201_v27 }
  0x51   : > { %429 = vmatprep.mubr.bf16.mxu0 %v3066_v3  ;;  %542 = vmatprep.mubr.bf16.mxu1 %v3066_v3 }
  0x58   : > { %2646 = vmatmul.mubr.msk.bf16.gmra.mrb[28].mxu0 %vm289_vm1, %v3208_v30  ;;  %2655 = vmatmul.mubr.msk.bf16.gmra.mrb[28].mxu1 %vm289_vm1, %v3208_v30 }
  0xf3   : > { %v361_v60 = vpop.f32.mrb[0].mxu0 }
  0xf4   : > { %v3313_v61 = vadd.f32 %v3303_v58, %v361_v60  ;;  %v363_v62 = vpop.f32.mrb[1].mxu0 }
  0xf5   : > { %v3316_v63 = vadd.f32 %v3307_v59, %v363_v62  ;;  %v365_v0 = vpop.f32.mrb[2].mxu0 }
  0xf6   : > { %v3319_v1 = vadd.f32 %v3303_v58, %v365_v0  ;;  %v367_v2 = vpop.f32.mrb[3].mxu0  ;;  %v641_v4 = vmul.f32 %v3313_v61, %v3313_v61 }
  0xf7   : > { %v3324_v5 = vadd.f32 %v3307_v59, %v367_v2  ;;  %v593_v3 = vadd.f32 %v3316_v63, %v3313_v61  ;;  %v642_v6 = vmul.f32 %v3316_v63, %v3316_v63 }
  0xf8   : > { %v643_v8 = vmul.f32 %v3319_v1, %v3319_v1 }
  0xf9   : > { %594 = vadd.xlane.f32.xlu0 %v593_v3  ;;  %v673_v7 = vadd.f32 %v642_v6, %v641_v4  ;;  %v644_v9 = vmul.f32 %v3324_v5, %v3324_v5  ;;  %v596_v11 = vadd.f32 %v3324_v5, %v3319_v1  ;;  %v2838_v3 = vld [vmem:[%s4737_s2 + $0xa4] ss:$8 sps:$4 sm:$0xff]  }
  0xfa   : > { %1221 = vmatprep.subr.bf16.mxu1 %v2838_v3 }
  0xfb   : > { %674 = vadd.xlane.f32.xlu1 %v673_v7  ;;  %v371_v10 = vpop.f32.mrb[4].mxu0  ;;  %v676_v16 = vadd.f32 %v644_v9, %v643_v8  ;;  %v2836_v9 = vld [vmem:[%s4737_s2 + $0xa0] ss:$8 sps:$4 sm:$0xff]  }
  0xfc   : > { %v3339_v12 = vadd.f32 %v3303_v58, %v371_v10  ;;  %v373_v13 = vpop.f32.mrb[5].mxu0  ;;  %1222 = vmatpush1.bf16.msra.mxu1 %v2836_v9 }
  0xfd   : > { %v3342_v14 = vadd.f32 %v3307_v59, %v373_v13  ;;  %597 = vadd.xlane.f32.xlu0 %v596_v11  ;;  %v375_v15 = vpop.f32.mrb[6].mxu0 }
  0xfe   : > { %v3345_v17 = vadd.f32 %v3303_v58, %v375_v15  ;;  %v377_v18 = vpop.f32.mrb[7].mxu0  ;;  %v645_v21 = vmul.f32 %v3339_v12, %v3339_v12 }
  0xff   : > { %v3348_v19 = vadd.f32 %v3307_v59, %v377_v18  ;;  %677 = vadd.xlane.f32.xlu1 %v676_v16  ;;  %v599_v20 = vadd.f32 %v3342_v14, %v3339_v12  ;;  %v646_v22 = vmul.f32 %v3342_v14, %v3342_v14  ;;  %v2841_v16 = vld [vmem:[%s4737_s2 + $0xb4] ss:$8 sps:$4 sm:$0xff]  }
 0x100   : > { %v647_v24 = vmul.f32 %v3345_v17, %v3345_v17  ;;  %1223 = vmatprep.subr.bf16.mxu1 %v2841_v16 }
 0x101   : > { %600 = vadd.xlane.f32.xlu0 %v599_v20  ;;  %v602_v23 = vadd.f32 %v3348_v19, %v3345_v17  ;;  %v648_v25 = vmul.f32 %v3348_v19, %v3348_v19  ;;  %v679_v27 = vadd.f32 %v646_v22, %v645_v21  ;;  %v2839_v22 = vld [vmem:[%s4737_s2 + $0xb0] ss:$8 sps:$4 sm:$0xff]  }
 0x102   : > { %1224 = vmatpush1.bf16.msra.mxu1 %v2839_v22  ;;  %v2851_v22 = vld [vmem:[%s4737_s2 + $0xf0] ss:$8 sps:$4 sm:$0xff]  }
 0x103   : > { %603 = vadd.xlane.f32.xlu1 %v602_v23  ;;  %v381_v26 = vpop.f32.mrb[8].mxu0  ;;  %v682_v32 = vadd.f32 %v648_v25, %v647_v24 }
 0x104   : > { %v3363_v28 = vadd.f32 %v3303_v58, %v381_v26  ;;  %v383_v29 = vpop.f32.mrb[9].mxu0 }
 0x105   : > { %v3366_v30 = vadd.f32 %v3307_v59, %v383_v29  ;;  %680 = vadd.xlane.f32.xlu0 %v679_v27  ;;  %v385_v31 = vpop.f32.mrb[10].mxu0 }
 0x106   : > { %v3369_v33 = vadd.f32 %v3303_v58, %v385_v31  ;;  %v387_v34 = vpop.f32.mrb[11].mxu0  ;;  %v649_v37 = vmul.f32 %v3363_v28, %v3363_v28  ;;  %v2844_v31 = vld [vmem:[%s4737_s2 + $0xc4] ss:$8 sps:$4 sm:$0xff]  }
 0x107   : > { %v3372_v35 = vadd.f32 %v3307_v59, %v387_v34  ;;  %683 = vadd.xlane.f32.xlu1 %v682_v32  ;;  %v605_v36 = vadd.f32 %v3366_v30, %v3363_v28  ;;  %v650_v38 = vmul.f32 %v3366_v30, %v3366_v30  ;;  %1225 = vmatprep.subr.bf16.mxu1 %v2844_v31 }
 0x108   : > { %v651_v42 = vmul.f32 %v3369_v33, %v3369_v33 }
 0x109   : > { %606 = vadd.xlane.f32.xlu0 %v605_v36  ;;  %v608_v41 = vadd.f32 %v3372_v35, %v3369_v33  ;;  %v652_v43 = vmul.f32 %v3372_v35, %v3372_v35  ;;  %v685_v45 = vadd.f32 %v650_v38, %v649_v37  ;;  %v2842_v37 = vld [vmem:[%s4737_s2 + $0xc0] ss:$8 sps:$4 sm:$0xff]  }
 0x10a   : > { %1226 = vmatpush1.bf16.msra.mxu1 %v2842_v37 }
 0x10b   : > { %609 = vadd.xlane.f32.xlu1 %v608_v41  ;;  %v391_v44 = vpop.f32.mrb[12].mxu0  ;;  %v688_v51 = vadd.f32 %v652_v43, %v651_v42  ;;  %v2847_v42 = vld [vmem:[%s4737_s2 + $0xd4] ss:$8 sps:$4 sm:$0xff]  }
 0x10c   : > { %v3393_v46 = vadd.f32 %v3303_v58, %v391_v44  ;;  %v393_v47 = vpop.f32.mrb[13].mxu0  ;;  %1227 = vmatprep.subr.bf16.mxu1 %v2847_v42 }
 0x10d   : > { %v3399_v49 = vadd.f32 %v3307_v59, %v393_v47  ;;  %686 = vadd.xlane.f32.xlu0 %v685_v45  ;;  %v395_v50 = vpop.f32.mrb[14].mxu0  ;;  %v2845_v47 = vld [vmem:[%s4737_s2 + $0xd0] ss:$8 sps:$4 sm:$0xff]  }
 0x10e   : > { %v3405_v53 = vadd.f32 %v3303_v58, %v395_v50  ;;  %v397_v60 = vpop.f32.mrb[15].mxu0  ;;  %v653_v62 = vmul.f32 %v3393_v46, %v3393_v46  ;;  %1228 = vmatpush1.bf16.msra.mxu1 %v2845_v47 }
 0x10f   : > { %v3410_v0 = vadd.f32 %v3307_v59, %v397_v60  ;;  %689 = vadd.xlane.f32.xlu1 %v688_v51  ;;  %v611_v2 = vadd.f32 %v3399_v49, %v3393_v46  ;;  %v654_v4 = vmul.f32 %v3399_v49, %v3399_v49 }
 0x110   : > { %v655_v7 = vmul.f32 %v3405_v53, %v3405_v53 }
 0x111   : > { %612 = vadd.xlane.f32.xlu0 %v611_v2  ;;  %v614_v6 = vadd.f32 %v3410_v0, %v3405_v53  ;;  %v656_v8 = vmul.f32 %v3410_v0, %v3410_v0  ;;  %v691_v11 = vadd.f32 %v654_v4, %v653_v62  ;;  %v2850_v2 = vld [vmem:[%s4737_s2 + $0xe4] ss:$8 sps:$4 sm:$0xff]  }
 0x112   : > { %1229 = vmatprep.subr.bf16.mxu1 %v2850_v2 }
 0x113   : > { %615 = vadd.xlane.f32.xlu1 %v614_v6  ;;  %v401_v10 = vpop.f32.mrb[16].mxu0  ;;  %v694_v21 = vadd.f32 %v656_v8, %v655_v7  ;;  %v2848_v7 = vld [vmem:[%s4737_s2 + $0xe0] ss:$8 sps:$4 sm:$0xff]  }
 0x114   : > { %v3429_v13 = vadd.f32 %v3303_v58, %v401_v10  ;;  %v403_v15 = vpop.f32.mrb[17].mxu0  ;;  %1230 = vmatpush1.bf16.msra.mxu1 %v2848_v7 }
 0x115   : > { %v3435_v18 = vadd.f32 %v3307_v59, %v403_v15  ;;  %692 = vadd.xlane.f32.xlu0 %v691_v11  ;;  %v405_v20 = vpop.f32.mrb[18].mxu0  ;;  %v2853_v15 = vld [vmem:[%s4737_s2 + $0xf4] ss:$8 sps:$4 sm:$0xff]  }
 0x116   : > { %v3441_v23 = vadd.f32 %v3303_v58, %v405_v20  ;;  %v407_v24 = vpop.f32.mrb[19].mxu0  ;;  %v657_v25 = vmul.f32 %v3429_v13, %v3429_v13  ;;  %1231 = vmatprep.subr.bf16.mxu1 %v2853_v15 }
 0x117   : > { %v3446_v26 = vadd.f32 %v3307_v59, %v407_v24  ;;  %695 = vadd.xlane.f32.xlu1 %v694_v21  ;;  %v617_v27 = vadd.f32 %v3435_v18, %v3429_v13  ;;  %v658_v29 = vmul.f32 %v3435_v18, %v3435_v18 }
 0x118   : > { %v659_v34 = vmul.f32 %v3441_v23, %v3441_v23  ;;  %1232 = vmatpush1.bf16.msra.mxu1 %v2851_v22 }
 0x119   : > { %618 = vadd.xlane.f32.xlu0 %v617_v27  ;;  %v620_v32 = vadd.f32 %v3446_v26, %v3441_v23  ;;  %v660_v36 = vmul.f32 %v3446_v26, %v3446_v26  ;;  %v697_v39 = vadd.f32 %v658_v29, %v657_v25 }
 0x11b   : > { %621 = vadd.xlane.f32.xlu1 %v620_v32  ;;  %v411_v38 = vpop.f32.mrb[20].mxu0  ;;  %v700_v45 = vadd.f32 %v660_v36, %v659_v34 }
 0x11c   : > { %v3465_v40 = vadd.f32 %v3303_v58, %v411_v38  ;;  %v413_v41 = vpop.f32.mrb[21].mxu0 }
 0x11d   : > { %v3471_v43 = vadd.f32 %v3307_v59, %v413_v41  ;;  %698 = vadd.xlane.f32.xlu0 %v697_v39  ;;  %v415_v44 = vpop.f32.mrb[22].mxu0 }
 0x11e   : > { %v3477_v48 = vadd.f32 %v3303_v58, %v415_v44  ;;  %v417_v50 = vpop.f32.mrb[23].mxu0  ;;  %v661_v51 = vmul.f32 %v3465_v40, %v3465_v40 }
 0x11f   : > { %v3482_v52 = vadd.f32 %v3307_v59, %v417_v50  ;;  %701 = vadd.xlane.f32.xlu1 %v700_v45  ;;  %v623_v60 = vadd.f32 %v3471_v43, %v3465_v40  ;;  %v662_v62 = vmul.f32 %v3471_v43, %v3471_v43 }
 0x120   : > { %v663_v3 = vmul.f32 %v3477_v48, %v3477_v48 }
 0x121   : > { %624 = vadd.xlane.f32.xlu0 %v623_v60  ;;  %v626_v4 = vadd.f32 %v3482_v52, %v3477_v48  ;;  %v664_v6 = vmul.f32 %v3482_v52, %v3482_v52  ;;  %v703_v9 = vadd.f32 %v662_v62, %v661_v51 }
 0x123   : > { %627 = vadd.xlane.f32.xlu1 %v626_v4  ;;  %v421_v8 = vpop.f32.mrb[24].mxu0  ;;  %v706_v21 = vadd.f32 %v664_v6, %v663_v3 }
 0x124   : > { %v3501_v10 = vadd.f32 %v3303_v58, %v421_v8  ;;  %v423_v11 = vpop.f32.mrb[25].mxu0 }
 0x125   : > { %v3507_v16 = vadd.f32 %v3307_v59, %v423_v11  ;;  %704 = vadd.xlane.f32.xlu0 %v703_v9  ;;  %v425_v20 = vpop.f32.mrb[26].mxu0 }
 0x126   : > { %v3513_v24 = vadd.f32 %v3303_v58, %v425_v20  ;;  %v427_v25 = vpop.f32.mrb[27].mxu0  ;;  %v665_v27 = vmul.f32 %v3501_v10, %v3501_v10 }
 0x127   : > { %v3518_v29 = vadd.f32 %v3307_v59, %v427_v25  ;;  %707 = vadd.xlane.f32.xlu1 %v706_v21  ;;  %v629_v31 = vadd.f32 %v3507_v16, %v3501_v10  ;;  %v666_v32 = vmul.f32 %v3507_v16, %v3507_v16 }
 0x128   : > { %v667_v36 = vmul.f32 %v3513_v24, %v3513_v24 }
 0x129   : > { %630 = vadd.xlane.f32.xlu0 %v629_v31  ;;  %v632_v34 = vadd.f32 %v3518_v29, %v3513_v24  ;;  %v668_v37 = vmul.f32 %v3518_v29, %v3518_v29  ;;  %v709_v39 = vadd.f32 %v666_v32, %v665_v27 }
 0x12b   : > { %633 = vadd.xlane.f32.xlu1 %v632_v34  ;;  %v431_v38 = vpop.f32.mrb[28].mxu0  ;;  %v712_v47 = vadd.f32 %v668_v37, %v667_v36 }
 0x12c   : > { %v3531_v41 = vadd.f32 %v3303_v58, %v431_v38  ;;  %v433_v42 = vpop.f32.mrb[29].mxu0 }
 0x12d   : > { %v3534_v44 = vadd.f32 %v3307_v59, %v433_v42  ;;  %710 = vadd.xlane.f32.xlu0 %v709_v39  ;;  %v435_v45 = vpop.f32.mrb[30].mxu0 }
 0x12e   : > { %v3537_v50 = vadd.f32 %v3303_v58, %v435_v45  ;;  %v437_v51 = vpop.f32.mrb[31].mxu0  ;;  %v669_v2 = vmul.f32 %v3531_v41, %v3531_v41 }
 0x12f   : > { %v3540_v60 = vadd.f32 %v3307_v59, %v437_v51  ;;  %713 = vadd.xlane.f32.xlu1 %v712_v47  ;;  %v635_v62 = vadd.f32 %v3534_v44, %v3531_v41  ;;  %v670_v4 = vmul.f32 %v3534_v44, %v3534_v44 }
 0x130   : > { %v671_v58 = vmul.f32 %v3537_v50, %v3537_v50 }
 0x131   : > { %636 = vadd.xlane.f32.xlu0 %v635_v62  ;;  %v638_v3 = vadd.f32 %v3540_v60, %v3537_v50  ;;  %v672_v59 = vmul.f32 %v3540_v60, %v3540_v60  ;;  %v715_v6 = vadd.f32 %v670_v4, %v669_v2  ;;  %v883_v4 = vsub.s32 1, %v3283_v54 }
 0x133   : > { %639 = vadd.xlane.f32.xlu1 %v638_v3  ;;  %v718_v7 = vadd.f32 %v672_v59, %v671_v58 }
 0x135   : > { %716 = vadd.xlane.f32.xlu0 %v715_v6 }
 0x137   : > { %719 = vadd.xlane.f32.xlu1 %v718_v7 }
 0x186   : > { %v595_v8 = vpop.xlane.xlu0 %594 }
 0x187   : > { %v721_v9 = vmul.f32 0.00390625, %v595_v8 }
 0x188   : > { %v675_v11 = vpop.xlane.xlu1 %674 }
 0x189   : > { %v737_v15 = vmul.f32 0.00390625, %v675_v11  ;;  %v753_v20 = vmul.f32 %v721_v9, %v721_v9 }
 0x18a   : > { %v598_v21 = vpop.xlane.xlu0 %597 }
 0x18b   : > { %v769_v22 = vsub.f32 %v737_v15, %v753_v20  ;;  %v722_v25 = vmul.f32 0.00390625, %v598_v21  ;;  %v818_v15 = vsub.f32 %v3316_v63, %v721_v9  ;;  %v3567_v21 = vrot.slane %v3299_v57, %v883_v4 }
 0x18c   : > { %v678_v27 = vpop.xlane.xlu1 %677 }
 0x18d   : > { %v785_v31 = vadd.f32 1e-05, %v769_v22  ;;  %v738_v32 = vmul.f32 0.00390625, %v678_v27  ;;  %v754_v34 = vmul.f32 %v722_v25, %v722_v25  ;;  %v923_v22 = vsub.s32 2, %v3283_v54 }
 0x18e   : > { %v601_v36 = vpop.xlane.xlu0 %600 }
 0x18f   : > { %2902 = vrsqrt.f32 %v785_v31  ;;  %v3554_v37 = vmul.f32 0.00390625, %v601_v36  ;;  %v770_v38 = vsub.f32 %v738_v32, %v754_v34  ;;  %v817_v32 = vsub.f32 %v3313_v61, %v721_v9 }
 0x190   : > { %v604_v39 = vpop.xlane.xlu1 %603  ;;  %v3583_v61 = vrot.slane %v3299_v57, %v923_v22  ;;  %v819_v9 = vsub.f32 %v3319_v1, %v722_v25 }
 0x191   : > { %v3556_v42 = vmul.f32 0.00390625, %v604_v39  ;;  %v786_v45 = vadd.f32 1e-05, %v770_v38  ;;  %v755_v51 = vmul.f32 %v3554_v37, %v3554_v37 }
 0x192   : > { %v681_v47 = vpop.xlane.xlu0 %680 }
 0x193   : > { %v739_v62 = vmul.f32 0.00390625, %v681_v47  ;;  %2904 = vrsqrt.f32 %v786_v45  ;;  %v756_v58 = vmul.f32 %v3556_v42, %v3556_v42  ;;  %v3576_v45 = vrot.slane %v3294_v56, %v883_v4 }
 0x194   : > { %v684_v2 = vpop.xlane.xlu1 %683  ;;  %v820_v4 = vsub.f32 %v3324_v5, %v722_v25  ;;  %v823_v57 = vsub.f32 %v3345_v17, %v3556_v42 }
 0x195   : > { %v771_v3 = vsub.f32 %v739_v62, %v755_v51  ;;  %v740_v59 = vmul.f32 0.00390625, %v684_v2  ;;  %v3580_v2 = vrot.slane %v3294_v56, %v923_v22  ;;  %v822_v56 = vsub.f32 %v3342_v14, %v3554_v37 }
 0x196   : > { %v607_v6 = vpop.xlane.xlu0 %606 }
 0x197   : > { %v787_v7 = vadd.f32 1e-05, %v771_v3  ;;  %v772_v8 = vsub.f32 %v740_v59, %v756_v58  ;;  %v3563_v11 = vmul.f32 0.00390625, %v607_v6 }
 0x198   : > { %v610_v20 = vpop.xlane.xlu1 %609 }
 0x199   : > { %v2903_v27 = vpop.eup %2902  ;;  %2906 = vrsqrt.f32 %v787_v7  ;;  %v788_v31 = vadd.f32 1e-05, %v772_v8  ;;  %v3571_v34 = vmul.f32 0.00390625, %v610_v20  ;;  %v757_v39 = vmul.f32 %v3563_v11, %v3563_v11 }
 0x19a   : > { %v687_v36 = vpop.xlane.xlu0 %686  ;;  %v850_v38 = vmul.f32 %v2903_v27, %v818_v15  ;;  %v849_v47 = vmul.f32 %v2903_v27, %v817_v32  ;;  %v821_v7 = vsub.f32 %v3339_v12, %v3554_v37  ;;  %v824_v27 = vsub.f32 %v3348_v19, %v3556_v42 }
 0x19b   : > { %2908 = vrsqrt.f32 %v788_v31  ;;  %v741_v63 = vmul.f32 0.00390625, %v687_v36  ;;  %v758_v58 = vmul.f32 %v3571_v34, %v3571_v34 }
 0x19c   : > { %v690_v51 = vpop.xlane.xlu1 %689  ;;  %v890_v62 = vmul.f32 %v3567_v21, %v850_v38  ;;  %v889_v12 = vmul.f32 %v3576_v45, %v849_v47 }
 0x19d   : > { %v773_v3 = vsub.f32 %v741_v63, %v757_v39  ;;  %v742_v59 = vmul.f32 0.00390625, %v690_v51  ;;  %v2905_v6 = vpop.eup %2904  ;;  %v828_v63 = vsub.f32 %v3372_v35, %v3571_v34 }
 0x19e   : > { %v613_v8 = vpop.xlane.xlu0 %612  ;;  %v851_v15 = vmul.f32 %v2905_v6, %v819_v9  ;;  %v852_v5 = vmul.f32 %v2905_v6, %v820_v4  ;;  %v930_v25 = vadd.f32 %v3583_v61, %v890_v62 }
 0x19f   : > { %v789_v1 = vadd.f32 1e-05, %v773_v3  ;;  %v774_v20 = vsub.f32 %v742_v59, %v758_v58  ;;  %v3595_v22 = vmul.f32 0.00390625, %v613_v8  ;;  %v929_v59 = vadd.f32 %v3580_v2, %v889_v12 }
 0x1a0   : > { %v616_v31 = vpop.xlane.xlu1 %615  ;;  %v892_v42 = vmul.f32 %v3567_v21, %v852_v5  ;;  %v891_v38 = vmul.f32 %v3576_v45, %v851_v15  ;;  %v962_v58 = vmax.f32 %v930_v25, 0.0 }
 0x1a1   : > { %2910 = vrsqrt.f32 %v789_v1  ;;  %v790_v37 = vadd.f32 1e-05, %v774_v20  ;;  %v3607_v36 = vmul.f32 0.00390625, %v616_v31  ;;  %v759_v47 = vmul.f32 %v3595_v22, %v3595_v22 }
 0x1a2   : > { %v693_v19 = vpop.xlane.xlu0 %692  ;;  %v932_v3 = vadd.f32 %v3583_v61, %v892_v42  ;;  %v931_v15 = vadd.f32 %v3580_v2, %v891_v38  ;;  %v961_v55 = vmax.f32 %v929_v59, 0.0 }
 0x1a3   : > { %v2907_v39 = vpop.eup %2906  ;;  %2912 = vrsqrt.f32 %v790_v37  ;;  %v743_v51 = vmul.f32 0.00390625, %v693_v19  ;;  %v760_v62 = vmul.f32 %v3607_v36, %v3607_v36 }
 0x1a4   : > { %v696_v9 = vpop.xlane.xlu1 %695  ;;  %v854_v35 = vmul.f32 %v2907_v39, %v822_v56  ;;  %v964_v20 = vmax.f32 %v932_v3, 0.0  ;;  %v853_v5 = vmul.f32 %v2907_v39, %v821_v7  ;;  %v963_v17 = vmax.f32 %v931_v15, 0.0 }
 0x1a5   : > { %v2909_v6 = vpop.eup %2908  ;;  %v775_v4 = vsub.f32 %v743_v51, %v759_v47  ;;  %v744_v8 = vmul.f32 0.00390625, %v696_v9  ;;  %v829_v56 = vsub.f32 %v3393_v46, %v3595_v22 }
 0x1a6   : > { %v619_v1 = vpop.xlane.xlu0 %618  ;;  %v856_v31 = vmul.f32 %v2909_v6, %v824_v27  ;;  %v855_v37 = vmul.f32 %v2909_v6, %v823_v57  ;;  %v994_v42 = vpack.c.bf16 %v964_v20, %v962_v58  ;;  %v894_v12 = vmul.f32 %v3567_v21, %v854_v35 }
 0x1a7   : > { %v791_v19 = vadd.f32 1e-05, %v775_v4  ;;  %v776_v32 = vsub.f32 %v744_v8, %v760_v62  ;;  %v3620_v14 = vmul.f32 0.00390625, %v619_v1  ;;  %v893_v7 = vmul.f32 %v3576_v45, %v853_v5 }
 0x1a8   : > { %v622_v25 = vpop.xlane.xlu1 %621  ;;  %v896_v47 = vmul.f32 %v3567_v21, %v856_v31  ;;  %1233 = vmatprep.mubr.bf16.mxu1 %v994_v42  ;;  %v993_v27 = vpack.c.bf16 %v963_v17, %v961_v55  ;;  %v934_v62 = vadd.f32 %v3583_v61, %v894_v12  ;;  %v895_v59 = vmul.f32 %v3576_v45, %v855_v37 }
 0x1a9   : > { %2914 = vrsqrt.f32 %v791_v19  ;;  %v792_v38 = vadd.f32 1e-05, %v776_v32  ;;  %v3627_v57 = vmul.f32 0.00390625, %v622_v25  ;;  %v761_v39 = vmul.f32 %v3620_v14, %v3620_v14 }
 0x1aa   : > { %v699_v51 = vpop.xlane.xlu0 %698  ;;  %v936_v58 = vadd.f32 %v3583_v61, %v896_v47  ;;  %v830_v32 = vsub.f32 %v3399_v49, %v3595_v22  ;;  %v831_v6 = vsub.f32 %v3405_v53, %v3607_v36  ;;  %1234 = vmatmul.mubr.bf16.vlgmr.msra.gmra.mrb[0].mxu1 %v993_v27  ;;  %v966_v4 = vmax.f32 %v934_v62, 0.0 }
 0x1ab   : > { %v2911_v9 = vpop.eup %2910  ;;  %2916 = vrsqrt.f32 %v792_v38  ;;  %v745_v3 = vmul.f32 0.00390625, %v699_v51  ;;  %v762_v55 = vmul.f32 %v3627_v57, %v3627_v57  ;;  %v933_v20 = vadd.f32 %v3580_v2, %v893_v7 }
 0x1ac   : > { %v702_v17 = vpop.xlane.xlu1 %701  ;;  %v968_v1 = vmax.f32 %v936_v58, 0.0  ;;  %v832_v31 = vsub.f32 %v3410_v0, %v3607_v36  ;;  %v935_v49 = vadd.f32 %v3580_v2, %v895_v59  ;;  %v4746_v37 = vsub.f32 %v3366_v30, %v3563_v11 }
 0x1ad   : > { %v2913_v8 = vpop.eup %2912  ;;  %v777_v15 = vsub.f32 %v745_v3, %v761_v39  ;;  %v746_v35 = vmul.f32 0.00390625, %v702_v17  ;;  %v965_v39 = vmax.f32 %v933_v20, 0.0  ;;  %v833_v62 = vsub.f32 %v3429_v13, %v3620_v14 }
 0x1ae   : > { %v625_v5 = vpop.xlane.xlu0 %624  ;;  %v858_v19 = vmul.f32 %v2911_v9, %v4746_v37  ;;  %v860_v42 = vmul.f32 %v2913_v8, %v828_v63  ;;  %v996_v38 = vpack.c.bf16 %v968_v1, %v966_v4  ;;  %v967_v51 = vmax.f32 %v935_v49, 0.0 }
 0x1af   : > { %v793_v25 = vadd.f32 1e-05, %v777_v15  ;;  %v778_v12 = vsub.f32 %v746_v35, %v762_v55  ;;  %v3647_v47 = vmul.f32 0.00390625, %v625_v5  ;;  %v4747_v30 = vsub.f32 %v3363_v28, %v3563_v11 }
 0x1b0   : > { %v628_v27 = vpop.xlane.xlu1 %627  ;;  %v898_v7 = vmul.f32 %v3567_v21, %v858_v19  ;;  %v900_v0 = vmul.f32 %v3567_v21, %v860_v42  ;;  %1243 = vmatprep.mubr.bf16.mxu1 %v996_v38  ;;  %v995_v59 = vpack.c.bf16 %v967_v51, %v965_v39  ;;  %v4748_v20 = vsub.f32 %v3369_v33, %v3571_v34 }
 0x1b1   : > { %2918 = vrsqrt.f32 %v793_v25  ;;  %v794_v3 = vadd.f32 1e-05, %v778_v12  ;;  %v857_v63 = vmul.f32 %v2911_v9, %v4747_v30  ;;  %v3656_v58 = vmul.f32 0.00390625, %v628_v27 }
 0x1b2   : > { %v763_v55 = vmul.f32 %v3647_v47, %v3647_v47  ;;  %v705_v17 = vpop.xlane.xlu0 %704  ;;  %v938_v4 = vadd.f32 %v3583_v61, %v898_v7  ;;  %v940_v1 = vadd.f32 %v3583_v61, %v900_v0  ;;  %v859_v5 = vmul.f32 %v2913_v8, %v4748_v20  ;;  %1244 = vmatmul.mubr.bf16.gmra.mrb[4].mxu1 %v995_v59 }
 0x1b3   : > { %v2915_v15 = vpop.eup %2914  ;;  %2920 = vrsqrt.f32 %v794_v3  ;;  %v747_v35 = vmul.f32 0.00390625, %v705_v17  ;;  %v834_v28 = vsub.f32 %v3435_v18, %v3620_v14  ;;  %v835_v11 = vsub.f32 %v3441_v23, %v3627_v57 }
 0x1b4   : > { %v764_v9 = vmul.f32 %v3656_v58, %v3656_v58  ;;  %v708_v49 = vpop.xlane.xlu1 %707  ;;  %v970_v37 = vmax.f32 %v938_v4, 0.0  ;;  %v972_v12 = vmax.f32 %v940_v1, 0.0  ;;  %v897_v38 = vmul.f32 %v3576_v45, %v857_v63 }
 0x1b5   : > { %v2917_v19 = vpop.eup %2916  ;;  %v779_v42 = vsub.f32 %v747_v35, %v763_v55  ;;  %v748_v25 = vmul.f32 0.00390625, %v708_v49  ;;  %v836_v33 = vsub.f32 %v3446_v26, %v3627_v57  ;;  %v899_v18 = vmul.f32 %v3576_v45, %v859_v5 }
 0x1b6   : > { %v631_v34 = vpop.xlane.xlu0 %630  ;;  %v862_v8 = vmul.f32 %v2915_v15, %v830_v32  ;;  %v864_v27 = vmul.f32 %v2917_v19, %v832_v31  ;;  %v998_v0 = vpack.c.bf16 %v972_v12, %v970_v37  ;;  %v937_v30 = vadd.f32 %v3580_v2, %v897_v38 }
 0x1b7   : > { %v795_v39 = vadd.f32 1e-05, %v779_v42  ;;  %v780_v51 = vsub.f32 %v748_v25, %v764_v9  ;;  %v3675_v7 = vmul.f32 0.00390625, %v631_v34  ;;  %v939_v59 = vadd.f32 %v3580_v2, %v899_v18 }
 0x1b8   : > { %v634_v3 = vpop.xlane.xlu1 %633  ;;  %v902_v63 = vmul.f32 %v3567_v21, %v862_v8  ;;  %v904_v55 = vmul.f32 %v3567_v21, %v864_v27  ;;  %v837_v26 = vsub.f32 %v3465_v40, %v3647_v47  ;;  %1253 = vmatprep.mubr.bf16.mxu1 %v998_v0  ;;  %v861_v31 = vmul.f32 %v2915_v15, %v829_v56 }
 0x1b9   : > { %2922 = vrsqrt.f32 %v795_v39  ;;  %v796_v32 = vadd.f32 1e-05, %v780_v51  ;;  %v3686_v17 = vmul.f32 0.00390625, %v634_v3  ;;  %v969_v4 = vmax.f32 %v937_v30, 0.0 }
 0x1ba   : > { %v971_v35 = vmax.f32 %v939_v59, 0.0  ;;  %v765_v1 = vmul.f32 %v3675_v7, %v3675_v7  ;;  %v711_v20 = vpop.xlane.xlu0 %710  ;;  %v942_v49 = vadd.f32 %v3583_v61, %v902_v63  ;;  %v944_v37 = vadd.f32 %v3583_v61, %v904_v55 }
 0x1bb   : > { %v2919_v5 = vpop.eup %2918  ;;  %2924 = vrsqrt.f32 %v796_v32  ;;  %v749_v9 = vmul.f32 0.00390625, %v711_v20  ;;  %v838_v42 = vsub.f32 %v3471_v43, %v3647_v47  ;;  %v839_v46 = vsub.f32 %v3477_v48, %v3656_v58 }
 0x1bc   : > { %v997_v22 = vpack.c.bf16 %v971_v35, %v969_v4  ;;  %v766_v56 = vmul.f32 %v3686_v17, %v3686_v17  ;;  %v714_v15 = vpop.xlane.xlu1 %713  ;;  %v974_v34 = vmax.f32 %v942_v49, 0.0  ;;  %v976_v18 = vmax.f32 %v944_v37, 0.0 }
 0x1bd   : > { %v2921_v25 = vpop.eup %2920  ;;  %v781_v12 = vsub.f32 %v749_v9, %v765_v1  ;;  %v750_v38 = vmul.f32 0.00390625, %v714_v15  ;;  %v863_v27 = vmul.f32 %v2917_v19, %v831_v6  ;;  %v901_v43 = vmul.f32 %v3576_v45, %v861_v31 }
 0x1be   : > { %1254 = vmatmul.mubr.bf16.gmra.mrb[8].mxu1 %v997_v22  ;;  %v637_v8 = vpop.xlane.xlu0 %636  ;;  %v866_v39 = vmul.f32 %v2919_v5, %v834_v28  ;;  %v868_v51 = vmul.f32 %v2921_v25, %v836_v33  ;;  %v1000_v59 = vpack.c.bf16 %v976_v18, %v974_v34  ;;  %v840_v53 = vsub.f32 %v3482_v52, %v3656_v58 }
 0x1bf   : > { %v797_v0 = vadd.f32 1e-05, %v781_v12  ;;  %v782_v3 = vsub.f32 %v750_v38, %v766_v56  ;;  %v3702_v30 = vmul.f32 0.00390625, %v637_v8  ;;  %v903_v55 = vmul.f32 %v3576_v45, %v863_v27 }
 0x1c0   : > { %v640_v63 = vpop.xlane.xlu1 %639  ;;  %v941_v32 = vadd.f32 %v3580_v2, %v901_v43  ;;  %v906_v4 = vmul.f32 %v3567_v21, %v866_v39  ;;  %v908_v35 = vmul.f32 %v3567_v21, %v868_v51  ;;  %v841_v36 = vsub.f32 %v3501_v10, %v3675_v7  ;;  %1263 = vmatprep.mubr.bf16.mxu1 %v1000_v59 }
 0x1c1   : > { %2926 = vrsqrt.f32 %v797_v0  ;;  %v798_v6 = vadd.f32 1e-05, %v782_v3  ;;  %v842_v28 = vsub.f32 %v3507_v16, %v3675_v7  ;;  %v3714_v19 = vmul.f32 0.00390625, %v640_v63 }
 0x1c2   : > { %v943_v33 = vadd.f32 %v3580_v2, %v903_v55  ;;  %v767_v31 = vmul.f32 %v3702_v30, %v3702_v30  ;;  %v717_v1 = vpop.xlane.xlu0 %716  ;;  %v946_v9 = vadd.f32 %v3583_v61, %v906_v4  ;;  %v948_v10 = vadd.f32 %v3583_v61, %v908_v35 }
 0x1c3   : > { %v2923_v20 = vpop.eup %2922  ;;  %2928 = vrsqrt.f32 %v798_v6  ;;  %v751_v52 = vmul.f32 0.00390625, %v717_v1  ;;  %v843_v49 = vsub.f32 %v3513_v24, %v3686_v17  ;;  %v973_v37 = vmax.f32 %v941_v32, 0.0 }
 0x1c4   : > { %v975_v16 = vmax.f32 %v943_v33, 0.0  ;;  %v768_v7 = vmul.f32 %v3714_v19, %v3714_v19  ;;  %v720_v22 = vpop.xlane.xlu1 %719  ;;  %v978_v38 = vmax.f32 %v946_v9, 0.0  ;;  %v980_v34 = vmax.f32 %v948_v10, 0.0 }
 0x1c5   : > { %v2925_v56 = vpop.eup %2924  ;;  %v783_v15 = vsub.f32 %v751_v52, %v767_v31  ;;  %v752_v12 = vmul.f32 0.00390625, %v720_v22  ;;  %v865_v8 = vmul.f32 %v2919_v5, %v833_v62  ;;  %v867_v24 = vmul.f32 %v2921_v25, %v835_v11 }
 0x1c6   : > { %v999_v18 = vpack.c.bf16 %v975_v16, %v973_v37  ;;  %v870_v27 = vmul.f32 %v2923_v20, %v838_v42  ;;  %v1002_v51 = vpack.c.bf16 %v980_v34, %v978_v38  ;;  %v872_v0 = vmul.f32 %v2925_v56, %v840_v53 }
 0x1c7   : > { %v799_v43 = vadd.f32 1e-05, %v783_v15  ;;  %v784_v39 = vsub.f32 %v752_v12, %v768_v7  ;;  %v905_v3 = vmul.f32 %v3576_v45, %v865_v8  ;;  %v907_v59 = vmul.f32 %v3576_v45, %v867_v24 }
 0x1c8   : > { %1264 = vmatmul.mubr.bf16.gmra.mrb[12].mxu1 %v999_v18  ;;  %v910_v63 = vmul.f32 %v3567_v21, %v870_v27  ;;  %v869_v13 = vmul.f32 %v2923_v20, %v837_v26  ;;  %v912_v23 = vmul.f32 %v3567_v21, %v872_v0  ;;  %v871_v57 = vmul.f32 %v2925_v56, %v839_v46 }
 0x1c9   : > { %2930 = vrsqrt.f32 %v799_v43  ;;  %v800_v14 = vadd.f32 1e-05, %v784_v39  ;;  %1273 = vmatprep.mubr.bf16.mxu1 %v1002_v51  ;;  %v945_v62 = vadd.f32 %v3580_v2, %v905_v3  ;;  %v947_v11 = vadd.f32 %v3580_v2, %v907_v59 }
 0x1ca   : > { %v950_v5 = vadd.f32 %v3583_v61, %v910_v63  ;;  %v909_v42 = vmul.f32 %v3576_v45, %v869_v13  ;;  %v844_v40 = vsub.f32 %v3518_v29, %v3686_v17  ;;  %v952_v47 = vadd.f32 %v3583_v61, %v912_v23 }
 0x1cb   : > { %v2927_v25 = vpop.eup %2926  ;;  %2932 = vrsqrt.f32 %v800_v14  ;;  %v911_v26 = vmul.f32 %v3576_v45, %v871_v57  ;;  %v977_v55 = vmax.f32 %v945_v62, 0.0  ;;  %v979_v48 = vmax.f32 %v947_v11, 0.0 }
 0x1cc   : > { %v982_v58 = vmax.f32 %v950_v5, 0.0  ;;  %v949_v46 = vadd.f32 %v3580_v2, %v909_v42  ;;  %v984_v4 = vmax.f32 %v952_v47, 0.0  ;;  %v874_v53 = vmul.f32 %v2927_v25, %v842_v28  ;;  %v2859_v5 = vld [vmem:[%s4738_s3 + $0x14] ss:$8 sps:$4 sm:$0xff]   ;;  %v2862_v42 = vld [vmem:[%s4738_s3 + $0x24] ss:$8 sps:$4 sm:$0xff]  }
 0x1cd   : > { %v2929_v32 = vpop.eup %2928  ;;  %v951_v35 = vadd.f32 %v3580_v2, %v911_v26  ;;  %v873_v6 = vmul.f32 %v2927_v25, %v841_v36  ;;  %v1001_v33 = vpack.c.bf16 %v979_v48, %v977_v55  ;;  %v846_v36 = vsub.f32 %v3534_v44, %v3702_v30  ;;  %v2860_v25 = vld [vmem:[%s4738_s3 + $0x20] ss:$8 sps:$4 sm:$0xff]   ;;  %v2863_v47 = vld [vmem:[%s4738_s3 + $0x30] ss:$8 sps:$4 sm:$0xff]   ;;  %v2868_v26 = vld [vmem:[%s4738_s3 + $0x44] ss:$8 sps:$4 sm:$0xff]  }
 0x1ce   : > { %v876_v31 = vmul.f32 %v2929_v32, %v844_v40  ;;  %v875_v1 = vmul.f32 %v2929_v32, %v843_v49  ;;  %v1004_v29 = vpack.c.bf16 %v984_v4, %v982_v58  ;;  %v914_v20 = vmul.f32 %v3567_v21, %v874_v53  ;;  %v2865_v40 = vld [vmem:[%s4738_s3 + $0x34] ss:$8 sps:$4 sm:$0xff]   ;;  %v2866_v55 = vld [vmem:[%s4738_s3 + $0x40] ss:$8 sps:$4 sm:$0xff]   ;;  %v2869_v58 = vld [vmem:[%s4738_s3 + $0x50] ss:$8 sps:$4 sm:$0xff]  }
 0x1cf   : > { %v983_v17 = vmax.f32 %v951_v35, 0.0  ;;  %v981_v10 = vmax.f32 %v949_v46, 0.0  ;;  %v913_v16 = vmul.f32 %v3576_v45, %v873_v6  ;;  %v845_v7 = vsub.f32 %v3531_v41, %v3702_v30  ;;  %v2871_v48 = vld [vmem:[%s4738_s3 + $0x54] ss:$8 sps:$4 sm:$0xff]   ;;  %v2874_v46 = vld [vmem:[%s4738_s3 + $0x64] ss:$8 sps:$4 sm:$0xff]  }
 0x1d0   : > { %1274 = vmatmul.mubr.bf16.gmra.mrb[16].mxu1 %v1001_v33  ;;  %v916_v52 = vmul.f32 %v3567_v21, %v876_v31  ;;  %v915_v9 = vmul.f32 %v3576_v45, %v875_v1  ;;  %v954_v37 = vadd.f32 %v3583_v61, %v914_v20  ;;  %v848_v22 = vsub.f32 %v3540_v60, %v3714_v19  ;;  %v2872_v32 = vld [vmem:[%s4738_s3 + $0x60] ss:$8 sps:$4 sm:$0xff]   ;;  %v2877_v4 = vld [vmem:[%s4738_s3 + $0x74] ss:$8 sps:$4 sm:$0xff]   ;;  %v2875_v35 = vld [vmem:[%s4738_s3 + $0x70] ss:$8 sps:$4 sm:$0xff]  }
 0x1d1   : > { %1283 = vmatprep.mubr.bf16.mxu1 %v1004_v29  ;;  %v1003_v56 = vpack.c.bf16 %v983_v17, %v981_v10  ;;  %v847_v8 = vsub.f32 %v3537_v50, %v3714_v19  ;;  %v953_v44 = vadd.f32 %v3580_v2, %v913_v16  ;;  %v1316_v53 = vsub.s32 3, %v3283_v54  ;;  %v3827_v6 = vld [vmem:[%s4739_s4] sm:$0xff]  ;;  %v3835_v31 = vld [vmem:[%s4739_s4 + $0x8] sm:$0xff] }
 0x1d2   : > { %v956_v28 = vadd.f32 %v3583_v61, %v916_v52  ;;  %v986_v15 = vmax.f32 %v954_v37, 0.0  ;;  %v955_v38 = vadd.f32 %v3580_v2, %v915_v9 }
 0x1d3   : > { %v2931_v49 = vpop.eup %2930  ;;  %v985_v3 = vmax.f32 %v953_v44, 0.0  ;;  %v3830_v33 = vrot.slane %v3827_v6, %v1316_v53  ;;  %v3838_v1 = vrot.slane %v3835_v31, %v1316_v53 }
 0x1d4   : > { %v988_v12 = vmax.f32 %v956_v28, 0.0  ;;  %v878_v34 = vmul.f32 %v2931_v49, %v846_v36  ;;  %v877_v41 = vmul.f32 %v2931_v49, %v845_v7  ;;  %v987_v60 = vmax.f32 %v955_v38, 0.0 }
 0x1d5   : > { %v2933_v18 = vpop.eup %2932 }
 0x1d6   : > { %v1006_v24 = vpack.c.bf16 %v988_v12, %v986_v15  ;;  %v880_v27 = vmul.f32 %v2933_v18, %v848_v22  ;;  %v918_v43 = vmul.f32 %v3567_v21, %v878_v34  ;;  %v879_v30 = vmul.f32 %v2933_v18, %v847_v8 }
 0x1d7   : > { %v917_v19 = vmul.f32 %v3576_v45, %v877_v41  ;;  %v1005_v59 = vpack.c.bf16 %v987_v60, %v985_v3 }
 0x1d8   : > { %1284 = vmatmul.mubr.bf16.gmra.mrb[20].mxu1 %v1003_v56  ;;  %v920_v39 = vmul.f32 %v3567_v21, %v880_v27  ;;  %v958_v51 = vadd.f32 %v3583_v61, %v918_v43  ;;  %v919_v0 = vmul.f32 %v3576_v45, %v879_v30  ;;  %v2856_v45 = vld [vmem:[%s4738_s3 + $0x4] ss:$8 sps:$4 sm:$0xff]  }
 0x1d9   : > { %1293 = vmatprep.mubr.bf16.mxu1 %v1006_v24  ;;  %v957_v57 = vadd.f32 %v3580_v2, %v917_v19  ;;  %1970 = vmatprep.subr.bf16.mxu0 %v2856_v45 }
 0x1da   : > { %v960_v50 = vadd.f32 %v3583_v61, %v920_v39  ;;  %v990_v63 = vmax.f32 %v958_v51, 0.0  ;;  %v959_v14 = vadd.f32 %v3580_v2, %v919_v0  ;;  %v2854_v61 = vld [vmem:[%s4738_s3] ss:$8 sps:$4 sm:$0xff]   ;;  %v2857_v2 = vld [vmem:[%s4738_s3 + $0x10] ss:$8 sps:$4 sm:$0xff]  }
 0x1db   : > { %v989_v62 = vmax.f32 %v957_v57, 0.0  ;;  %1971 = vmatpush1.bf16.msra.mxu0 %v2854_v61 }
 0x1dc   : > { %v992_v13 = vmax.f32 %v960_v50, 0.0  ;;  %v991_v21 = vmax.f32 %v959_v14, 0.0  ;;  %1972 = vmatprep.subr.bf16.mxu0 %v2859_v5 }
 0x1de   : > { %v1008_v23 = vpack.c.bf16 %v992_v13, %v990_v63  ;;  %v1007_v11 = vpack.c.bf16 %v991_v21, %v989_v62 }
 0x1df   : > { %1973 = vmatpush1.bf16.msra.mxu0 %v2857_v2 }
 0x1e0   : > { %1294 = vmatmul.mubr.bf16.gmra.mrb[24].mxu1 %v1005_v59  ;;  %1974 = vmatprep.subr.bf16.mxu0 %v2862_v42  ;;  %v2878_v42 = vld [vmem:[%s4738_s3 + $0x80] ss:$8 sps:$4 sm:$0xff]  }
 0x1e1   : > { %1303 = vmatprep.mubr.bf16.mxu1 %v1008_v23 }
 0x1e3   : > { %1975 = vmatpush1.bf16.msra.mxu0 %v2860_v25  ;;  %v2880_v25 = vld [vmem:[%s4738_s3 + $0x84] ss:$8 sps:$4 sm:$0xff]  }
 0x1e4   : > { %1976 = vmatprep.subr.bf16.mxu0 %v2865_v40 }
 0x1e7   : > { %1977 = vmatpush1.bf16.msra.mxu0 %v2863_v47 }
 0x1e8   : > { %1304 = vmatmul.mubr.bf16.gmra.mrb[28].mxu1 %v1007_v11  ;;  %1978 = vmatprep.subr.bf16.mxu0 %v2868_v26 }
 0x1eb   : > { %1979 = vmatpush1.bf16.msra.mxu0 %v2866_v55 }
 0x1ec   : > { %1980 = vmatprep.subr.bf16.mxu0 %v2871_v48 }
 0x1ef   : > { %1981 = vmatpush1.bf16.msra.mxu0 %v2869_v58 }
 0x1f0   : > { %1982 = vmatprep.subr.bf16.mxu0 %v2874_v46 }
 0x1f3   : > { %1983 = vmatpush1.bf16.msra.mxu0 %v2872_v32 }
 0x1f4   : > { %1984 = vmatprep.subr.bf16.mxu0 %v2877_v4 }
 0x1f7   : > { %1985 = vmatpush1.bf16.msra.mxu0 %v2875_v35  ;;  %v2883_v35 = vld [vmem:[%s4738_s3 + $0x94] ss:$8 sps:$4 sm:$0xff]  }
 0x1f8   : > { %1986 = vmatprep.subr.bf16.mxu0 %v2880_v25 }
 0x1fb   : > { %1987 = vmatpush1.bf16.msra.mxu0 %v2878_v42 }
 0x1fc   : > { %1988 = vmatprep.subr.bf16.mxu0 %v2883_v35 }
 0x27d   : > { %v1235_v29 = vpop.f32.mrb[0].mxu1 }
 0x27e   : > { %v3841_v17 = vadd.f32 %v3830_v33, %v1235_v29  ;;  %v1237_v20 = vpop.f32.mrb[1].mxu1 }
 0x27f   : > { %v3844_v52 = vadd.f32 %v3838_v1, %v1237_v20  ;;  %v1239_v9 = vpop.f32.mrb[2].mxu1 }
 0x280   : > { %v3847_v10 = vadd.f32 %v3830_v33, %v1239_v9  ;;  %v1241_v37 = vpop.f32.mrb[3].mxu1  ;;  %v1402_v28 = vmul.f32 %v3841_v17, %v3841_v17 }
 0x281   : > { %v3850_v16 = vadd.f32 %v3838_v1, %v1241_v37  ;;  %v1354_v36 = vadd.f32 %v3844_v52, %v3841_v17  ;;  %v1403_v49 = vmul.f32 %v3844_v52, %v3844_v52  ;;  %v2881_v37 = vld [vmem:[%s4738_s3 + $0x90] ss:$8 sps:$4 sm:$0xff]  }
 0x282   : > { %v1404_v22 = vmul.f32 %v3847_v10, %v3847_v10  ;;  %1989 = vmatpush1.bf16.msra.mxu0 %v2881_v37 }
 0x283   : > { %1355 = vadd.xlane.f32.xlu0 %v1354_v36  ;;  %v1357_v7 = vadd.f32 %v3850_v16, %v3847_v10  ;;  %v1405_v56 = vmul.f32 %v3850_v16, %v3850_v16  ;;  %v1434_v12 = vadd.f32 %v1403_v49, %v1402_v28 }
 0x285   : > { %v1245_v15 = vpop.f32.mrb[4].mxu1  ;;  %1358 = vadd.xlane.f32.xlu1 %v1357_v7  ;;  %v1437_v44 = vadd.f32 %v1405_v56, %v1404_v22  ;;  %v2886_v7 = vld [vmem:[%s4738_s3 + $0xa4] ss:$8 sps:$4 sm:$0xff]  }
 0x286   : > { %v3865_v38 = vadd.f32 %v3830_v33, %v1245_v15  ;;  %v1247_v34 = vpop.f32.mrb[5].mxu1  ;;  %v2884_v15 = vld [vmem:[%s4738_s3 + $0xa0] ss:$8 sps:$4 sm:$0xff]   ;;  %1990 = vmatprep.subr.bf16.mxu0 %v2886_v7 }
 0x287   : > { %v3868_v18 = vadd.f32 %v3838_v1, %v1247_v34  ;;  %v1249_v8 = vpop.f32.mrb[6].mxu1  ;;  %1435 = vadd.xlane.f32.xlu0 %v1434_v12  ;;  %1991 = vmatpush1.bf16.msra.mxu0 %v2884_v15  ;;  %v2896_v7 = vld [vmem:[%s4738_s3 + $0xe0] ss:$8 sps:$4 sm:$0xff]  }
 0x288   : > { %v3871_v24 = vadd.f32 %v3830_v33, %v1249_v8  ;;  %v1251_v27 = vpop.f32.mrb[7].mxu1  ;;  %v1406_v30 = vmul.f32 %v3865_v38, %v3865_v38 }
 0x289   : > { %v3874_v43 = vadd.f32 %v3838_v1, %v1251_v27  ;;  %1438 = vadd.xlane.f32.xlu1 %v1437_v44  ;;  %v1360_v41 = vadd.f32 %v3868_v18, %v3865_v38  ;;  %v1407_v60 = vmul.f32 %v3868_v18, %v3868_v18 }
 0x28a   : > { %v1408_v51 = vmul.f32 %v3871_v24, %v3871_v24 }
 0x28b   : > { %1361 = vadd.xlane.f32.xlu0 %v1360_v41  ;;  %v1363_v39 = vadd.f32 %v3874_v43, %v3871_v24  ;;  %v1409_v0 = vmul.f32 %v3874_v43, %v3874_v43  ;;  %v1440_v3 = vadd.f32 %v1407_v60, %v1406_v30  ;;  %v2889_v60 = vld [vmem:[%s4738_s3 + $0xb4] ss:$8 sps:$4 sm:$0xff]  }
 0x28c   : > { %1992 = vmatprep.subr.bf16.mxu0 %v2889_v60  ;;  %v2901_v60 = vld [vmem:[%s4738_s3 + $0xf4] ss:$8 sps:$4 sm:$0xff]  }
 0x28d   : > { %1364 = vadd.xlane.f32.xlu1 %v1363_v39  ;;  %v1443_v19 = vadd.f32 %v1409_v0, %v1408_v51 }
 0x28f   : > { %1441 = vadd.xlane.f32.xlu0 %v1440_v3 }
 0x291   : > { %v1255_v50 = vpop.f32.mrb[8].mxu1  ;;  %1444 = vadd.xlane.f32.xlu1 %v1443_v19 }
 0x292   : > { %v3889_v59 = vadd.f32 %v3830_v33, %v1255_v50  ;;  %v1257_v63 = vpop.f32.mrb[9].mxu1  ;;  %v2887_v50 = vld [vmem:[%s4738_s3 + $0xb0] ss:$8 sps:$4 sm:$0xff]  }
 0x293   : > { %v3892_v13 = vadd.f32 %v3838_v1, %v1257_v63  ;;  %v1259_v14 = vpop.f32.mrb[10].mxu1  ;;  %1993 = vmatpush1.bf16.msra.mxu0 %v2887_v50 }
 0x294   : > { %v3895_v23 = vadd.f32 %v3830_v33, %v1259_v14  ;;  %v1261_v57 = vpop.f32.mrb[11].mxu1  ;;  %v1410_v11 = vmul.f32 %v3889_v59, %v3889_v59 }
 0x295   : > { %v3898_v21 = vadd.f32 %v3838_v1, %v1261_v57  ;;  %v1366_v62 = vadd.f32 %v3892_v13, %v3889_v59  ;;  %v1411_v61 = vmul.f32 %v3892_v13, %v3892_v13  ;;  %v2890_v57 = vld [vmem:[%s4738_s3 + $0xc0] ss:$8 sps:$4 sm:$0xff]  }
 0x296   : > { %v1412_v5 = vmul.f32 %v3895_v23, %v3895_v23 }
 0x297   : > { %1367 = vadd.xlane.f32.xlu0 %v1366_v62  ;;  %v1369_v45 = vadd.f32 %v3898_v21, %v3895_v23  ;;  %v1413_v2 = vmul.f32 %v3898_v21, %v3898_v21  ;;  %v1446_v40 = vadd.f32 %v1411_v61, %v1410_v11  ;;  %v2892_v62 = vld [vmem:[%s4738_s3 + $0xc4] ss:$8 sps:$4 sm:$0xff]  }
 0x298   : > { %1994 = vmatprep.subr.bf16.mxu0 %v2892_v62 }
 0x299   : > { %1370 = vadd.xlane.f32.xlu1 %v1369_v45  ;;  %v1449_v26 = vadd.f32 %v1413_v2, %v1412_v5  ;;  %1995 = vmatpush1.bf16.msra.mxu0 %v2890_v57 }
 0x29b   : > { %v1265_v47 = vpop.f32.mrb[12].mxu1  ;;  %1447 = vadd.xlane.f32.xlu0 %v1446_v40 }
 0x29c   : > { %v3919_v55 = vadd.f32 %v3830_v33, %v1265_v47  ;;  %v1267_v48 = vpop.f32.mrb[13].mxu1 }
 0x29d   : > { %v3922_v58 = vadd.f32 %v3838_v1, %v1267_v48  ;;  %v1269_v46 = vpop.f32.mrb[14].mxu1  ;;  %1450 = vadd.xlane.f32.xlu1 %v1449_v26  ;;  %v2895_v26 = vld [vmem:[%s4738_s3 + $0xd4] ss:$8 sps:$4 sm:$0xff]  }
 0x29e   : > { %v3925_v32 = vadd.f32 %v3830_v33, %v1269_v46  ;;  %v1271_v4 = vpop.f32.mrb[15].mxu1  ;;  %v1414_v20 = vmul.f32 %v3919_v55, %v3919_v55  ;;  %1996 = vmatprep.subr.bf16.mxu0 %v2895_v26 }
 0x29f   : > { %v3931_v53 = vadd.f32 %v3838_v1, %v1271_v4  ;;  %v1372_v29 = vadd.f32 %v3922_v58, %v3919_v55  ;;  %v1415_v9 = vmul.f32 %v3922_v58, %v3922_v58 }
 0x2a0   : > { %v1416_v28 = vmul.f32 %v3925_v32, %v3925_v32 }
 0x2a1   : > { %1373 = vadd.xlane.f32.xlu0 %v1372_v29  ;;  %v1375_v36 = vadd.f32 %v3931_v53, %v3925_v32  ;;  %v1417_v49 = vmul.f32 %v3931_v53, %v3931_v53  ;;  %v1452_v56 = vadd.f32 %v1415_v9, %v1414_v20  ;;  %v2893_v29 = vld [vmem:[%s4738_s3 + $0xd0] ss:$8 sps:$4 sm:$0xff]  }
 0x2a2   : > { %1997 = vmatpush1.bf16.msra.mxu0 %v2893_v29 }
 0x2a3   : > { %v1275_v22 = vpop.f32.mrb[16].mxu1  ;;  %1376 = vadd.xlane.f32.xlu1 %v1375_v36  ;;  %v1455_v27 = vadd.f32 %v1417_v49, %v1416_v28  ;;  %v2898_v36 = vld [vmem:[%s4738_s3 + $0xe4] ss:$8 sps:$4 sm:$0xff]  }
 0x2a4   : > { %v3955_v12 = vadd.f32 %v3830_v33, %v1275_v22  ;;  %v1277_v34 = vpop.f32.mrb[17].mxu1  ;;  %1998 = vmatprep.subr.bf16.mxu0 %v2898_v36 }
 0x2a5   : > { %v3958_v8 = vadd.f32 %v3838_v1, %v1277_v34  ;;  %v1279_v44 = vpop.f32.mrb[18].mxu1  ;;  %1453 = vadd.xlane.f32.xlu0 %v1452_v56 }
 0x2a6   : > { %v3961_v41 = vadd.f32 %v3830_v33, %v1279_v44  ;;  %v1281_v30 = vpop.f32.mrb[19].mxu1  ;;  %v1418_v0 = vmul.f32 %v3955_v12, %v3955_v12  ;;  %1999 = vmatpush1.bf16.msra.mxu0 %v2896_v7 }
 0x2a7   : > { %v3967_v39 = vadd.f32 %v3838_v1, %v1281_v30  ;;  %1456 = vadd.xlane.f32.xlu1 %v1455_v27  ;;  %v1378_v51 = vadd.f32 %v3958_v8, %v3955_v12  ;;  %v1419_v3 = vmul.f32 %v3958_v8, %v3958_v8  ;;  %2000 = vmatprep.subr.bf16.mxu0 %v2901_v60 }
 0x2a8   : > { %v1420_v63 = vmul.f32 %v3961_v41, %v3961_v41 }
 0x2a9   : > { %1379 = vadd.xlane.f32.xlu0 %v1378_v51  ;;  %v1381_v19 = vadd.f32 %v3967_v39, %v3961_v41  ;;  %v1421_v14 = vmul.f32 %v3967_v39, %v3967_v39  ;;  %v1458_v61 = vadd.f32 %v1419_v3, %v1418_v0 }
 0x2ab   : > { %v1285_v11 = vpop.f32.mrb[20].mxu1  ;;  %1382 = vadd.xlane.f32.xlu1 %v1381_v19  ;;  %v1461_v25 = vadd.f32 %v1421_v14, %v1420_v63  ;;  %v2899_v19 = vld [vmem:[%s4738_s3 + $0xf0] ss:$8 sps:$4 sm:$0xff]  }
 0x2ac   : > { %v3991_v45 = vadd.f32 %v3830_v33, %v1285_v11  ;;  %v1287_v5 = vpop.f32.mrb[21].mxu1  ;;  %2001 = vmatpush1.bf16.msra.mxu0 %v2899_v19 }
 0x2ad   : > { %v3994_v2 = vadd.f32 %v3838_v1, %v1287_v5  ;;  %v1289_v42 = vpop.f32.mrb[22].mxu1  ;;  %1459 = vadd.xlane.f32.xlu0 %v1458_v61 }
 0x2ae   : > { %v3997_v40 = vadd.f32 %v3830_v33, %v1289_v42  ;;  %v1291_v47 = vpop.f32.mrb[23].mxu1  ;;  %v1422_v4 = vmul.f32 %v3991_v45, %v3991_v45 }
 0x2af   : > { %v4003_v48 = vadd.f32 %v3838_v1, %v1291_v47  ;;  %1462 = vadd.xlane.f32.xlu1 %v1461_v25  ;;  %v1384_v46 = vadd.f32 %v3994_v2, %v3991_v45  ;;  %v1423_v35 = vmul.f32 %v3994_v2, %v3994_v2 }
 0x2b0   : > { %v1424_v9 = vmul.f32 %v3997_v40, %v3997_v40 }
 0x2b1   : > { %1385 = vadd.xlane.f32.xlu0 %v1384_v46  ;;  %v1387_v20 = vadd.f32 %v4003_v48, %v3997_v40  ;;  %v1425_v37 = vmul.f32 %v4003_v48, %v4003_v48  ;;  %v1464_v49 = vadd.f32 %v1423_v35, %v1422_v4 }
 0x2b3   : > { %v1295_v28 = vpop.f32.mrb[24].mxu1  ;;  %1388 = vadd.xlane.f32.xlu1 %v1387_v20  ;;  %v1467_v44 = vadd.f32 %v1425_v37, %v1424_v9 }
 0x2b4   : > { %v4027_v22 = vadd.f32 %v3830_v33, %v1295_v28  ;;  %v1297_v56 = vpop.f32.mrb[25].mxu1 }
 0x2b5   : > { %v4030_v15 = vadd.f32 %v3838_v1, %v1297_v56  ;;  %v1299_v34 = vpop.f32.mrb[26].mxu1  ;;  %1465 = vadd.xlane.f32.xlu0 %v1464_v49 }
 0x2b6   : > { %v4033_v27 = vadd.f32 %v3830_v33, %v1299_v34  ;;  %v1301_v30 = vpop.f32.mrb[27].mxu1  ;;  %v1426_v3 = vmul.f32 %v4027_v22, %v4027_v22 }
 0x2b7   : > { %v4039_v51 = vadd.f32 %v3838_v1, %v1301_v30  ;;  %1468 = vadd.xlane.f32.xlu1 %v1467_v44  ;;  %v1390_v0 = vadd.f32 %v4030_v15, %v4027_v22  ;;  %v1427_v50 = vmul.f32 %v4030_v15, %v4030_v15 }
 0x2b8   : > { %v1428_v14 = vmul.f32 %v4033_v27, %v4033_v27 }
 0x2b9   : > { %1391 = vadd.xlane.f32.xlu0 %v1390_v0  ;;  %v1393_v63 = vadd.f32 %v4039_v51, %v4033_v27  ;;  %v1429_v57 = vmul.f32 %v4039_v51, %v4039_v51  ;;  %v1470_v11 = vadd.f32 %v1427_v50, %v1426_v3 }
 0x2bb   : > { %1394 = vadd.xlane.f32.xlu1 %v1393_v63  ;;  %v1305_v62 = vpop.f32.mrb[28].mxu1  ;;  %v1473_v47 = vadd.f32 %v1429_v57, %v1428_v14 }
 0x2bc   : > { %v4057_v61 = vadd.f32 %v3830_v33, %v1305_v62  ;;  %v1307_v5 = vpop.f32.mrb[29].mxu1 }
 0x2bd   : > { %v4060_v42 = vadd.f32 %v3838_v1, %v1307_v5  ;;  %1471 = vadd.xlane.f32.xlu0 %v1470_v11  ;;  %v1309_v25 = vpop.f32.mrb[30].mxu1 }
 0x2be   : > { %v4063_v26 = vadd.f32 %v3830_v33, %v1309_v25  ;;  %v1311_v46 = vpop.f32.mrb[31].mxu1  ;;  %v1430_v29 = vmul.f32 %v4057_v61, %v4057_v61 }
 0x2bf   : > { %v4066_v4 = vadd.f32 %v3838_v1, %v1311_v46  ;;  %1474 = vadd.xlane.f32.xlu1 %v1473_v47  ;;  %v1396_v35 = vadd.f32 %v4060_v42, %v4057_v61  ;;  %v1431_v20 = vmul.f32 %v4060_v42, %v4060_v42 }
 0x2c0   : > { %v1432_v33 = vmul.f32 %v4063_v26, %v4063_v26 }
 0x2c1   : > { %1397 = vadd.xlane.f32.xlu0 %v1396_v35  ;;  %v1399_v9 = vadd.f32 %v4066_v4, %v4063_v26  ;;  %v1433_v1 = vmul.f32 %v4066_v4, %v4066_v4  ;;  %v1476_v37 = vadd.f32 %v1431_v20, %v1430_v29 }
 0x2c3   : > { %1400 = vadd.xlane.f32.xlu1 %v1399_v9  ;;  %v1479_v36 = vadd.f32 %v1433_v1, %v1432_v33  ;;  %v1644_v33 = vsub.s32 4, %v3283_v54 }
 0x2c5   : > { %1477 = vadd.xlane.f32.xlu0 %v1476_v37 }
 0x2c7   : > { %1480 = vadd.xlane.f32.xlu1 %v1479_v36  ;;  %v1684_v36 = vsub.s32 5, %v3283_v54 }
 0x310   : > { %v1356_v28 = vpop.xlane.xlu0 %1355 }
 0x311   : > { %v1482_v49 = vmul.f32 0.00390625, %v1356_v28 }
 0x312   : > { %v1359_v7 = vpop.xlane.xlu1 %1358 }
 0x313   : > { %v1483_v56 = vmul.f32 0.00390625, %v1359_v7  ;;  %v1514_v44 = vmul.f32 %v1482_v49, %v1482_v49 }
 0x314   : > { %v1436_v34 = vpop.xlane.xlu0 %1435 }
 0x315   : > { %v1498_v30 = vmul.f32 0.00390625, %v1436_v34  ;;  %v1515_v3 = vmul.f32 %v1483_v56, %v1483_v56 }
 0x316   : > { %v1439_v60 = vpop.xlane.xlu1 %1438 }
 0x317   : > { %v1530_v0 = vsub.f32 %v1498_v30, %v1514_v44  ;;  %v1499_v50 = vmul.f32 0.00390625, %v1439_v60  ;;  %v1578_v44 = vsub.f32 %v3841_v17, %v1482_v49  ;;  %v1579_v30 = vsub.f32 %v3844_v52, %v1482_v49 }
 0x318   : > { %v1362_v19 = vpop.xlane.xlu0 %1361  ;;  %v1580_v17 = vsub.f32 %v3847_v10, %v1483_v56  ;;  %v1581_v52 = vsub.f32 %v3850_v16, %v1483_v56 }
 0x319   : > { %v1546_v63 = vadd.f32 1e-05, %v1530_v0  ;;  %v1531_v14 = vsub.f32 %v1499_v50, %v1515_v3  ;;  %v4080_v57 = vmul.f32 0.00390625, %v1362_v19  ;;  %v4095_v0 = vrot.slane %v3827_v6, %v1644_v33 }
 0x31a   : > { %v1365_v62 = vpop.xlane.xlu1 %1364  ;;  %v4098_v3 = vrot.slane %v3835_v31, %v1644_v33 }
 0x31b   : > { %2934 = vrsqrt.f32 %v1546_v63  ;;  %v1547_v11 = vadd.f32 1e-05, %v1531_v14  ;;  %v4082_v5 = vmul.f32 0.00390625, %v1365_v62  ;;  %v1516_v47 = vmul.f32 %v4080_v57, %v4080_v57 }
 0x31c   : > { %v1442_v25 = vpop.xlane.xlu0 %1441  ;;  %v4103_v63 = vrot.slane %v3827_v6, %v1684_v36  ;;  %v4106_v14 = vrot.slane %v3835_v31, %v1684_v36  ;;  %v1582_v36 = vsub.f32 %v3865_v38, %v4080_v57 }
 0x31d   : > { %2936 = vrsqrt.f32 %v1547_v11  ;;  %v1500_v46 = vmul.f32 0.00390625, %v1442_v25  ;;  %v1517_v20 = vmul.f32 %v4082_v5, %v4082_v5 }
 0x31e   : > { %v1445_v35 = vpop.xlane.xlu1 %1444 }
 0x31f   : > { %v1532_v29 = vsub.f32 %v1500_v46, %v1516_v47  ;;  %v1501_v9 = vmul.f32 0.00390625, %v1445_v35 }
 0x321   : > { %v1548_v1 = vadd.f32 1e-05, %v1532_v29  ;;  %v1533_v37 = vsub.f32 %v1501_v9, %v1517_v20 }
 0x323   : > { %2938 = vrsqrt.f32 %v1548_v1  ;;  %v1549_v7 = vadd.f32 1e-05, %v1533_v37 }
 0x324   : > { %v1368_v28 = vpop.xlane.xlu0 %1367 }
 0x325   : > { %v4090_v34 = vmul.f32 0.00390625, %v1368_v28  ;;  %v2935_v50 = vpop.eup %2934  ;;  %2940 = vrsqrt.f32 %v1549_v7  ;;  %v1583_v28 = vsub.f32 %v3868_v18, %v4080_v57 }
 0x326   : > { %v1371_v60 = vpop.xlane.xlu1 %1370  ;;  %v1610_v49 = vmul.f32 %v2935_v50, %v1578_v44  ;;  %v1611_v11 = vmul.f32 %v2935_v50, %v1579_v30  ;;  %v1585_v30 = vsub.f32 %v3874_v43, %v4082_v5 }
 0x327   : > { %v4100_v19 = vmul.f32 0.00390625, %v1371_v60  ;;  %v2937_v25 = vpop.eup %2936  ;;  %v1518_v47 = vmul.f32 %v4090_v34, %v4090_v34 }
 0x328   : > { %v1448_v62 = vpop.xlane.xlu0 %1447  ;;  %v1612_v35 = vmul.f32 %v2937_v25, %v1580_v17  ;;  %v1613_v20 = vmul.f32 %v2937_v25, %v1581_v52  ;;  %v1651_v6 = vmul.f32 %v4098_v3, %v1611_v11  ;;  %v1650_v31 = vmul.f32 %v4095_v0, %v1610_v49 }
 0x329   : > { %v1502_v46 = vmul.f32 0.00390625, %v1448_v62  ;;  %v1519_v10 = vmul.f32 %v4100_v19, %v4100_v19 }
 0x32a   : > { %v1451_v29 = vpop.xlane.xlu1 %1450  ;;  %v1653_v56 = vmul.f32 %v4098_v3, %v1613_v20  ;;  %v1691_v33 = vadd.f32 %v4106_v14, %v1651_v6  ;;  %v1652_v1 = vmul.f32 %v4095_v0, %v1612_v35  ;;  %v1690_v37 = vadd.f32 %v4103_v63, %v1650_v31 }
 0x32b   : > { %v1534_v9 = vsub.f32 %v1502_v46, %v1518_v47  ;;  %v1503_v16 = vmul.f32 0.00390625, %v1451_v29  ;;  %v1584_v29 = vsub.f32 %v3871_v24, %v4082_v5 }
 0x32c   : > { %v1693_v50 = vadd.f32 %v4106_v14, %v1653_v56  ;;  %v1723_v17 = vmax.f32 %v1691_v33, 0.0  ;;  %v1692_v52 = vadd.f32 %v4103_v63, %v1652_v1  ;;  %v1722_v38 = vmax.f32 %v1690_v37, 0.0 }
 0x32d   : > { %v1550_v7 = vadd.f32 1e-05, %v1534_v9  ;;  %v1535_v44 = vsub.f32 %v1503_v16, %v1519_v10  ;;  %v2939_v49 = vpop.eup %2938 }
 0x32e   : > { %v1374_v60 = vpop.xlane.xlu0 %1373  ;;  %v1725_v47 = vmax.f32 %v1693_v50, 0.0  ;;  %v1724_v18 = vmax.f32 %v1692_v52, 0.0  ;;  %v1615_v57 = vmul.f32 %v2939_v49, %v1583_v28  ;;  %v1614_v46 = vmul.f32 %v2939_v49, %v1582_v36 }
 0x32f   : > { %2942 = vrsqrt.f32 %v1550_v7  ;;  %v1551_v62 = vadd.f32 1e-05, %v1535_v44  ;;  %v4128_v11 = vmul.f32 0.00390625, %v1374_v60  ;;  %v2941_v35 = vpop.eup %2940 }
 0x330   : > { %v1377_v25 = vpop.xlane.xlu1 %1376  ;;  %v1755_v6 = vpack.c.bf16 %v1725_v47, %v1723_v17  ;;  %v1754_v31 = vpack.c.bf16 %v1724_v18, %v1722_v38  ;;  %v1617_v9 = vmul.f32 %v2941_v35, %v1585_v30  ;;  %v1655_v33 = vmul.f32 %v4098_v3, %v1615_v57 }
 0x331   : > { %2944 = vrsqrt.f32 %v1551_v62  ;;  %v4130_v43 = vmul.f32 0.00390625, %v1377_v25  ;;  %v1520_v10 = vmul.f32 %v4128_v11, %v4128_v11  ;;  %v1616_v37 = vmul.f32 %v2941_v35, %v1584_v29 }
 0x332   : > { %v1454_v20 = vpop.xlane.xlu0 %1453  ;;  %2002 = vmatprep.mubr.bf16.mxu0 %v1755_v6  ;;  %v1657_v1 = vmul.f32 %v4098_v3, %v1617_v9  ;;  %v1654_v36 = vmul.f32 %v4095_v0, %v1614_v46  ;;  %v1695_v44 = vadd.f32 %v4106_v14, %v1655_v33  ;;  %v1586_v17 = vsub.f32 %v3889_v59, %v4090_v34 }
 0x333   : > { %v1504_v16 = vmul.f32 0.00390625, %v1454_v20  ;;  %v1521_v24 = vmul.f32 %v4130_v43, %v4130_v43  ;;  %2003 = vmatmul.mubr.bf16.vlgmr.msra.gmra.mrb[32].mxu0 %v1754_v31  ;;  %v1656_v60 = vmul.f32 %v4095_v0, %v1616_v37  ;;  %v1587_v38 = vsub.f32 %v3892_v13, %v4090_v34 }
 0x334   : > { %v1457_v56 = vpop.xlane.xlu1 %1456  ;;  %v1697_v30 = vadd.f32 %v4106_v14, %v1657_v1  ;;  %v1694_v50 = vadd.f32 %v4103_v63, %v1654_v36  ;;  %v1727_v47 = vmax.f32 %v1695_v44, 0.0  ;;  %v1589_v35 = vsub.f32 %v3898_v21, %v4100_v19 }
 0x335   : > { %v1536_v28 = vsub.f32 %v1504_v16, %v1520_v10  ;;  %v1505_v5 = vmul.f32 0.00390625, %v1457_v56  ;;  %v1696_v57 = vadd.f32 %v4103_v63, %v1656_v60  ;;  %v1588_v33 = vsub.f32 %v3895_v23, %v4100_v19 }
 0x336   : > { %v1380_v7 = vpop.xlane.xlu0 %1379  ;;  %v1729_v18 = vmax.f32 %v1697_v30, 0.0  ;;  %v1726_v20 = vmax.f32 %v1694_v50, 0.0 }
 0x337   : > { %v1552_v52 = vadd.f32 1e-05, %v1536_v28  ;;  %v1537_v49 = vsub.f32 %v1505_v5, %v1521_v24  ;;  %v4147_v62 = vmul.f32 0.00390625, %v1380_v7  ;;  %v1728_v13 = vmax.f32 %v1696_v57, 0.0 }
 0x338   : > { %v1383_v25 = vpop.xlane.xlu1 %1382  ;;  %v1757_v9 = vpack.c.bf16 %v1729_v18, %v1727_v47  ;;  %v1591_v47 = vsub.f32 %v3922_v58, %v4128_v11  ;;  %v1592_v57 = vsub.f32 %v3925_v32, %v4130_v43 }
 0x339   : > { %v2943_v46 = vpop.eup %2942  ;;  %2946 = vrsqrt.f32 %v1552_v52  ;;  %v1553_v29 = vadd.f32 1e-05, %v1537_v49  ;;  %v4154_v59 = vmul.f32 0.00390625, %v1383_v25  ;;  %v1522_v6 = vmul.f32 %v4147_v62, %v4147_v62 }
 0x33a   : > { %v1460_v31 = vpop.xlane.xlu0 %1459  ;;  %v1619_v16 = vmul.f32 %v2943_v46, %v1587_v38  ;;  %v1618_v56 = vmul.f32 %v2943_v46, %v1586_v17  ;;  %2012 = vmatprep.mubr.bf16.mxu0 %v1757_v9  ;;  %v1756_v37 = vpack.c.bf16 %v1728_v13, %v1726_v20  ;;  %v1590_v25 = vsub.f32 %v3919_v55, %v4128_v11 }
 0x33b   : > { %v2945_v34 = vpop.eup %2944  ;;  %2948 = vrsqrt.f32 %v1553_v29  ;;  %v1506_v10 = vmul.f32 0.00390625, %v1460_v31  ;;  %v1523_v21 = vmul.f32 %v4154_v59, %v4154_v59  ;;  %v1593_v46 = vsub.f32 %v3931_v53, %v4130_v43 }
 0x33c   : > { %v1463_v1 = vpop.xlane.xlu1 %1462  ;;  %v1621_v24 = vmul.f32 %v2945_v34, %v1589_v35  ;;  %v1659_v5 = vmul.f32 %v4098_v3, %v1619_v16  ;;  %2013 = vmatmul.mubr.bf16.gmra.mrb[36].mxu0 %v1756_v37  ;;  %v1620_v44 = vmul.f32 %v2945_v34, %v1588_v33  ;;  %v1658_v30 = vmul.f32 %v4095_v0, %v1618_v56 }
 0x33d   : > { %v1538_v36 = vsub.f32 %v1506_v10, %v1522_v6  ;;  %v1507_v28 = vmul.f32 0.00390625, %v1463_v1 }
 0x33e   : > { %v1386_v7 = vpop.xlane.xlu0 %1385  ;;  %v1661_v23 = vmul.f32 %v4098_v3, %v1621_v24  ;;  %v1699_v52 = vadd.f32 %v4106_v14, %v1659_v5  ;;  %v1660_v49 = vmul.f32 %v4095_v0, %v1620_v44  ;;  %v1698_v38 = vadd.f32 %v4103_v63, %v1658_v30 }
 0x33f   : > { %v1554_v60 = vadd.f32 1e-05, %v1538_v36  ;;  %v1539_v50 = vsub.f32 %v1507_v28, %v1523_v21  ;;  %v4164_v17 = vmul.f32 0.00390625, %v1386_v7 }
 0x340   : > { %v1389_v19 = vpop.xlane.xlu1 %1388  ;;  %v1701_v20 = vadd.f32 %v4106_v14, %v1661_v23  ;;  %v1700_v58 = vadd.f32 %v4103_v63, %v1660_v49  ;;  %v1731_v9 = vmax.f32 %v1699_v52, 0.0  ;;  %v1730_v53 = vmax.f32 %v1698_v38, 0.0 }
 0x341   : > { %2950 = vrsqrt.f32 %v1554_v60  ;;  %v1555_v18 = vadd.f32 1e-05, %v1539_v50  ;;  %v4178_v35 = vmul.f32 0.00390625, %v1389_v19  ;;  %v1524_v55 = vmul.f32 %v4164_v17, %v4164_v17 }
 0x342   : > { %v1466_v29 = vpop.xlane.xlu0 %1465  ;;  %v1733_v13 = vmax.f32 %v1701_v20, 0.0  ;;  %v1732_v16 = vmax.f32 %v1700_v58, 0.0  ;;  %v1594_v19 = vsub.f32 %v3955_v12, %v4147_v62  ;;  %v1595_v52 = vsub.f32 %v3958_v8, %v4147_v62 }
 0x343   : > { %v2947_v6 = vpop.eup %2946  ;;  %2952 = vrsqrt.f32 %v1555_v18  ;;  %v1508_v31 = vmul.f32 0.00390625, %v1466_v29  ;;  %v1525_v11 = vmul.f32 %v4178_v35, %v4178_v35  ;;  %v1596_v62 = vsub.f32 %v3961_v41, %v4154_v59 }
 0x344   : > { %v1469_v32 = vpop.xlane.xlu1 %1468  ;;  %v1623_v56 = vmul.f32 %v2947_v6, %v1591_v47  ;;  %v1759_v21 = vpack.c.bf16 %v1733_v13, %v1731_v9  ;;  %v1622_v37 = vmul.f32 %v2947_v6, %v1590_v25  ;;  %v1758_v7 = vpack.c.bf16 %v1732_v16, %v1730_v53 }
 0x345   : > { %v2949_v43 = vpop.eup %2948  ;;  %v1540_v34 = vsub.f32 %v1508_v31, %v1524_v55  ;;  %v1509_v10 = vmul.f32 0.00390625, %v1469_v32  ;;  %v1597_v20 = vsub.f32 %v3967_v39, %v4154_v59 }
 0x346   : > { %v1392_v33 = vpop.xlane.xlu0 %1391  ;;  %v1625_v1 = vmul.f32 %v2949_v43, %v1593_v46  ;;  %v1624_v36 = vmul.f32 %v2949_v43, %v1592_v57  ;;  %2022 = vmatprep.mubr.bf16.mxu0 %v1759_v21  ;;  %v1663_v30 = vmul.f32 %v4098_v3, %v1623_v56  ;;  %v1662_v50 = vmul.f32 %v4095_v0, %v1622_v37 }
 0x347   : > { %v1556_v28 = vadd.f32 1e-05, %v1540_v34  ;;  %v1541_v24 = vsub.f32 %v1509_v10, %v1525_v11  ;;  %v4186_v5 = vmul.f32 0.00390625, %v1392_v33  ;;  %2023 = vmatmul.mubr.bf16.gmra.mrb[40].mxu0 %v1758_v7 }
 0x348   : > { %v1395_v44 = vpop.xlane.xlu1 %1394  ;;  %v1665_v60 = vmul.f32 %v4098_v3, %v1625_v1  ;;  %v1664_v23 = vmul.f32 %v4095_v0, %v1624_v36  ;;  %v1703_v18 = vadd.f32 %v4106_v14, %v1663_v30  ;;  %v1702_v12 = vadd.f32 %v4103_v63, %v1662_v50 }
 0x349   : > { %2954 = vrsqrt.f32 %v1556_v28  ;;  %v1557_v49 = vadd.f32 1e-05, %v1541_v24  ;;  %v4196_v38 = vmul.f32 0.00390625, %v1395_v44  ;;  %v1526_v25 = vmul.f32 %v4186_v5, %v4186_v5 }
 0x34a   : > { %v1472_v47 = vpop.xlane.xlu0 %1471  ;;  %v1705_v57 = vadd.f32 %v4106_v14, %v1665_v60  ;;  %v1704_v8 = vadd.f32 %v4103_v63, %v1664_v23  ;;  %v1735_v31 = vmax.f32 %v1703_v18, 0.0  ;;  %v1734_v13 = vmax.f32 %v1702_v12, 0.0 }
 0x34b   : > { %v2951_v46 = vpop.eup %2950  ;;  %2956 = vrsqrt.f32 %v1557_v49  ;;  %v1510_v29 = vmul.f32 0.00390625, %v1472_v47  ;;  %v1527_v6 = vmul.f32 %v4196_v38, %v4196_v38  ;;  %v1598_v28 = vsub.f32 %v3991_v45, %v4164_v17 }
 0x34c   : > { %v1475_v55 = vpop.xlane.xlu1 %1474  ;;  %v1737_v9 = vmax.f32 %v1705_v57, 0.0  ;;  %v1736_v43 = vmax.f32 %v1704_v8, 0.0  ;;  %v1627_v34 = vmul.f32 %v2951_v46, %v1595_v52  ;;  %v1626_v16 = vmul.f32 %v2951_v46, %v1594_v19 }
 0x34d   : > { %v2953_v58 = vpop.eup %2952  ;;  %v1542_v11 = vsub.f32 %v1510_v29, %v1526_v25  ;;  %v1511_v32 = vmul.f32 0.00390625, %v1475_v55  ;;  %v1599_v24 = vsub.f32 %v3994_v2, %v4164_v17  ;;  %v1600_v17 = vsub.f32 %v3997_v40, %v4178_v35 }
 0x34e   : > { %v1398_v53 = vpop.xlane.xlu0 %1397  ;;  %v1629_v10 = vmul.f32 %v2953_v58, %v1597_v20  ;;  %v1761_v39 = vpack.c.bf16 %v1737_v9, %v1735_v31  ;;  %v1760_v21 = vpack.c.bf16 %v1736_v43, %v1734_v13  ;;  %v1667_v1 = vmul.f32 %v4098_v3, %v1627_v34 }
 0x34f   : > { %v1558_v56 = vadd.f32 1e-05, %v1542_v11  ;;  %v1543_v41 = vsub.f32 %v1511_v32, %v1527_v6  ;;  %v4210_v33 = vmul.f32 0.00390625, %v1398_v53  ;;  %v1628_v36 = vmul.f32 %v2953_v58, %v1596_v62 }
 0x350   : > { %v1401_v59 = vpop.xlane.xlu1 %1400  ;;  %v1669_v37 = vmul.f32 %v4098_v3, %v1629_v10  ;;  %2032 = vmatprep.mubr.bf16.mxu0 %v1761_v39  ;;  %v1707_v50 = vadd.f32 %v4106_v14, %v1667_v1  ;;  %v1666_v52 = vmul.f32 %v4095_v0, %v1626_v16  ;;  %v1601_v49 = vsub.f32 %v4003_v48, %v4178_v35 }
 0x351   : > { %2958 = vrsqrt.f32 %v1558_v56  ;;  %v1559_v7 = vadd.f32 1e-05, %v1543_v41  ;;  %v4218_v44 = vmul.f32 0.00390625, %v1401_v59  ;;  %2033 = vmatmul.mubr.bf16.gmra.mrb[44].mxu0 %v1760_v21  ;;  %v1528_v30 = vmul.f32 %v4210_v33, %v4210_v33 }
 0x352   : > { %v1478_v60 = vpop.xlane.xlu0 %1477  ;;  %v1709_v23 = vadd.f32 %v4106_v14, %v1669_v37  ;;  %v1668_v2 = vmul.f32 %v4095_v0, %v1628_v36  ;;  %v1739_v18 = vmax.f32 %v1707_v50, 0.0  ;;  %v1706_v8 = vadd.f32 %v4103_v63, %v1666_v52 }
 0x353   : > { %v2955_v19 = vpop.eup %2954  ;;  %2960 = vrsqrt.f32 %v1559_v7  ;;  %v1512_v45 = vmul.f32 0.00390625, %v1478_v60  ;;  %v1529_v25 = vmul.f32 %v4218_v44, %v4218_v44  ;;  %v1603_v13 = vsub.f32 %v4030_v15, %v4186_v5 }
 0x354   : > { %v1481_v47 = vpop.xlane.xlu1 %1480  ;;  %v1741_v12 = vmax.f32 %v1709_v23, 0.0  ;;  %v1708_v62 = vadd.f32 %v4103_v63, %v1668_v2  ;;  %v1631_v20 = vmul.f32 %v2955_v19, %v1599_v24  ;;  %v1630_v55 = vmul.f32 %v2955_v19, %v1598_v28 }
 0x355   : > { %v2957_v57 = vpop.eup %2956  ;;  %v1544_v46 = vsub.f32 %v1512_v45, %v1528_v30  ;;  %v1513_v29 = vmul.f32 0.00390625, %v1481_v47  ;;  %v1738_v48 = vmax.f32 %v1706_v8, 0.0  ;;  %v1602_v39 = vsub.f32 %v4027_v22, %v4186_v5 }
 0x356   : > { %v1633_v6 = vmul.f32 %v2957_v57, %v1601_v49  ;;  %v1763_v58 = vpack.c.bf16 %v1741_v12, %v1739_v18  ;;  %v1740_v35 = vmax.f32 %v1708_v62, 0.0  ;;  %v1671_v11 = vmul.f32 %v4098_v3, %v1631_v20 }
 0x357   : > { %v1560_v40 = vadd.f32 1e-05, %v1544_v46  ;;  %v1545_v31 = vsub.f32 %v1513_v29, %v1529_v25  ;;  %v1632_v9 = vmul.f32 %v2957_v57, %v1600_v17  ;;  %v1670_v43 = vmul.f32 %v4095_v0, %v1630_v55 }
 0x358   : > { %v1673_v32 = vmul.f32 %v4098_v3, %v1633_v6  ;;  %2042 = vmatprep.mubr.bf16.mxu0 %v1763_v58  ;;  %v1762_v34 = vpack.c.bf16 %v1740_v35, %v1738_v48  ;;  %v1711_v10 = vadd.f32 %v4106_v14, %v1671_v11  ;;  %v1605_v59 = vsub.f32 %v4039_v51, %v4196_v38 }
 0x359   : > { %2962 = vrsqrt.f32 %v1560_v40  ;;  %v1561_v53 = vadd.f32 1e-05, %v1545_v31  ;;  %v1672_v56 = vmul.f32 %v4095_v0, %v1632_v9  ;;  %v1710_v15 = vadd.f32 %v4103_v63, %v1670_v43 }
 0x35a   : > { %v1713_v16 = vadd.f32 %v4106_v14, %v1673_v32  ;;  %2043 = vmatmul.mubr.bf16.gmra.mrb[48].mxu0 %v1762_v34  ;;  %v1743_v21 = vmax.f32 %v1711_v10, 0.0  ;;  %v1604_v24 = vsub.f32 %v4033_v27, %v4196_v38  ;;  %v1606_v38 = vsub.f32 %v4057_v61, %v4210_v33 }
 0x35b   : > { %v2959_v41 = vpop.eup %2958  ;;  %2964 = vrsqrt.f32 %v1561_v53  ;;  %v1712_v37 = vadd.f32 %v4103_v63, %v1672_v56  ;;  %v1742_v7 = vmax.f32 %v1710_v15, 0.0  ;;  %v1607_v17 = vsub.f32 %v4060_v42, %v4210_v33 }
 0x35c   : > { %v1745_v1 = vmax.f32 %v1713_v16, 0.0  ;;  %v1635_v36 = vmul.f32 %v2959_v41, %v1603_v13  ;;  %v1634_v30 = vmul.f32 %v2959_v41, %v1602_v39  ;;  %v1608_v47 = vsub.f32 %v4063_v26, %v4218_v44 }
 0x35d   : > { %v2961_v28 = vpop.eup %2960  ;;  %v1744_v22 = vmax.f32 %v1712_v37, 0.0  ;;  %v1609_v18 = vsub.f32 %v4066_v4, %v4218_v44 }
 0x35e   : > { %v1765_v60 = vpack.c.bf16 %v1745_v1, %v1743_v21  ;;  %v1637_v5 = vmul.f32 %v2961_v28, %v1605_v59  ;;  %v1675_v51 = vmul.f32 %v4098_v3, %v1635_v36  ;;  %v1636_v50 = vmul.f32 %v2961_v28, %v1604_v24 }
 0x35f   : > { %v1674_v23 = vmul.f32 %v4095_v0, %v1634_v30  ;;  %v1764_v19 = vpack.c.bf16 %v1744_v22, %v1742_v7 }
 0x360   : > { %2052 = vmatprep.mubr.bf16.mxu0 %v1765_v60  ;;  %v1677_v45 = vmul.f32 %v4098_v3, %v1637_v5  ;;  %v1715_v52 = vadd.f32 %v4106_v14, %v1675_v51  ;;  %v1676_v2 = vmul.f32 %v4095_v0, %v1636_v50 }
 0x361   : > { %v1714_v27 = vadd.f32 %v4103_v63, %v1674_v23 }
 0x362   : > { %v1717_v49 = vadd.f32 %v4106_v14, %v1677_v45  ;;  %v1716_v57 = vadd.f32 %v4103_v63, %v1676_v2  ;;  %2053 = vmatmul.mubr.bf16.gmra.mrb[52].mxu0 %v1764_v19  ;;  %v1747_v46 = vmax.f32 %v1715_v52, 0.0 }
 0x363   : > { %v2963_v25 = vpop.eup %2962  ;;  %v1746_v62 = vmax.f32 %v1714_v27, 0.0 }
 0x364   : > { %v1749_v29 = vmax.f32 %v1717_v49, 0.0  ;;  %v1639_v12 = vmul.f32 %v2963_v25, %v1607_v17  ;;  %v1638_v8 = vmul.f32 %v2963_v25, %v1606_v38  ;;  %v1748_v20 = vmax.f32 %v1716_v57, 0.0 }
 0x365   : > { %v2965_v61 = vpop.eup %2964 }
 0x366   : > { %v1767_v42 = vpack.c.bf16 %v1749_v29, %v1747_v46  ;;  %v1641_v33 = vmul.f32 %v2965_v61, %v1609_v18  ;;  %v1679_v6 = vmul.f32 %v4098_v3, %v1639_v12  ;;  %v1640_v55 = vmul.f32 %v2965_v61, %v1608_v47 }
 0x367   : > { %v1678_v26 = vmul.f32 %v4095_v0, %v1638_v8  ;;  %v1766_v40 = vpack.c.bf16 %v1748_v20, %v1746_v62 }
 0x368   : > { %2062 = vmatprep.mubr.bf16.mxu0 %v1767_v42  ;;  %v1681_v4 = vmul.f32 %v4098_v3, %v1641_v33  ;;  %v1719_v44 = vadd.f32 %v4106_v14, %v1679_v6  ;;  %v1680_v31 = vmul.f32 %v4095_v0, %v1640_v55  ;;  %v1804_v3 = vsub.s32 6, %v3283_v54  ;;  %v4278_v0 = vld [vmem:[%s4739_s4] sm:$0xff] }
 0x369   : > { %v1718_v58 = vadd.f32 %v4103_v63, %v1678_v26 }
 0x36a   : > { %v1721_v48 = vadd.f32 %v4106_v14, %v1681_v4  ;;  %v1720_v35 = vadd.f32 %v4103_v63, %v1680_v31  ;;  %2063 = vmatmul.mubr.bf16.gmra.mrb[56].mxu0 %v1766_v40  ;;  %v1751_v11 = vmax.f32 %v1719_v44, 0.0  ;;  %v4281_v14 = vrot.slane %v4278_v0, %v1804_v3  ;;  %v4286_v63 = vld [vmem:[%s4739_s4 + $0x8] sm:$0xff] }
 0x36b   : > { %v1750_v9 = vmax.f32 %v1718_v58, 0.0  ;;  %v4289_v34 = vrot.slane %v4286_v63, %v1804_v3 }
 0x36c   : > { %v1753_v32 = vmax.f32 %v1721_v48, 0.0  ;;  %v1752_v13 = vmax.f32 %v1720_v35, 0.0 }
 0x36e   : > { %v1769_v53 = vpack.c.bf16 %v1753_v32, %v1751_v11  ;;  %v1768_v43 = vpack.c.bf16 %v1752_v13, %v1750_v9 }
 0x370   : > { %2072 = vmatprep.mubr.bf16.mxu0 %v1769_v53 }
 0x372   : > { %2073 = vmatmul.mubr.bf16.gmra.mrb[60].mxu0 %v1768_v43 }
 0x406   : > { %v2004_v10 = vpop.f32.mrb[32].mxu0 }
 0x407   : > { %v4292_v16 = vadd.f32 %v2004_v10, %v4281_v14  ;;  %v2006_v56 = vpop.f32.mrb[33].mxu0 }
 0x408   : > { %v4295_v41 = vadd.f32 %v2006_v56, %v4289_v34  ;;  %v2008_v39 = vpop.f32.mrb[34].mxu0 }
 0x409   : > { %v4298_v59 = vadd.f32 %v2008_v39, %v4281_v14  ;;  %v2010_v15 = vpop.f32.mrb[35].mxu0  ;;  %v2131_v37 = vmul.f32 %v4292_v16, %v4292_v16 }
 0x40a   : > { %v4301_v21 = vadd.f32 %v2010_v15, %v4289_v34  ;;  %v2083_v1 = vadd.f32 %v4295_v41, %v4292_v16  ;;  %v2132_v36 = vmul.f32 %v4295_v41, %v4295_v41 }
 0x40b   : > { %v2133_v24 = vmul.f32 %v4298_v59, %v4298_v59 }
 0x40c   : > { %2084 = vadd.xlane.f32.xlu0 %v2083_v1  ;;  %v2086_v28 = vadd.f32 %v4301_v21, %v4298_v59  ;;  %v2134_v7 = vmul.f32 %v4301_v21, %v4301_v21  ;;  %v2163_v30 = vadd.f32 %v2132_v36, %v2131_v37 }
 0x40e   : > { %2087 = vadd.xlane.f32.xlu1 %v2086_v28  ;;  %v2166_v51 = vadd.f32 %v2134_v7, %v2133_v24 }
 0x40f   : > { %v2014_v60 = vpop.f32.mrb[36].mxu0 }
 0x410   : > { %v4316_v22 = vadd.f32 %v2014_v60, %v4281_v14  ;;  %v2016_v5 = vpop.f32.mrb[37].mxu0  ;;  %2164 = vadd.xlane.f32.xlu0 %v2163_v30 }
 0x411   : > { %v4319_v50 = vadd.f32 %v2016_v5, %v4289_v34  ;;  %v2018_v23 = vpop.f32.mrb[38].mxu0 }
 0x412   : > { %v4322_v19 = vadd.f32 %v2018_v23, %v4281_v14  ;;  %v2020_v45 = vpop.f32.mrb[39].mxu0  ;;  %2167 = vadd.xlane.f32.xlu1 %v2166_v51  ;;  %v2135_v27 = vmul.f32 %v4316_v22, %v4316_v22 }
 0x413   : > { %v4325_v52 = vadd.f32 %v2020_v45, %v4289_v34  ;;  %v2089_v2 = vadd.f32 %v4319_v50, %v4316_v22  ;;  %v2136_v38 = vmul.f32 %v4319_v50, %v4319_v50 }
 0x414   : > { %v2137_v49 = vmul.f32 %v4322_v19, %v4322_v19 }
 0x415   : > { %2090 = vadd.xlane.f32.xlu0 %v2089_v2  ;;  %v2092_v17 = vadd.f32 %v4325_v52, %v4322_v19  ;;  %v2138_v25 = vmul.f32 %v4325_v52, %v4325_v52  ;;  %v2169_v47 = vadd.f32 %v2136_v38, %v2135_v27 }
 0x417   : > { %2093 = vadd.xlane.f32.xlu1 %v2092_v17  ;;  %v2172_v18 = vadd.f32 %v2138_v25, %v2137_v49 }
 0x419   : > { %2170 = vadd.xlane.f32.xlu0 %v2169_v47 }
 0x41a   : > { %v2024_v57 = vpop.f32.mrb[40].mxu0 }
 0x41b   : > { %v4340_v46 = vadd.f32 %v2024_v57, %v4281_v14  ;;  %v2026_v29 = vpop.f32.mrb[41].mxu0  ;;  %2173 = vadd.xlane.f32.xlu1 %v2172_v18 }
 0x41c   : > { %v4343_v12 = vadd.f32 %v2026_v29, %v4289_v34  ;;  %v2028_v8 = vpop.f32.mrb[42].mxu0 }
 0x41d   : > { %v4346_v61 = vadd.f32 %v2028_v8, %v4281_v14  ;;  %v2030_v62 = vpop.f32.mrb[43].mxu0  ;;  %v2139_v33 = vmul.f32 %v4340_v46, %v4340_v46 }
 0x41e   : > { %v4349_v20 = vadd.f32 %v2030_v62, %v4289_v34  ;;  %v2095_v42 = vadd.f32 %v4343_v12, %v4340_v46  ;;  %v2140_v6 = vmul.f32 %v4343_v12, %v4343_v12 }
 0x41f   : > { %v2141_v26 = vmul.f32 %v4346_v61, %v4346_v61 }
 0x420   : > { %2096 = vadd.xlane.f32.xlu0 %v2095_v42  ;;  %v2098_v55 = vadd.f32 %v4349_v20, %v4346_v61  ;;  %v2142_v40 = vmul.f32 %v4349_v20, %v4349_v20  ;;  %v2175_v4 = vadd.f32 %v2140_v6, %v2139_v33 }
 0x422   : > { %2099 = vadd.xlane.f32.xlu1 %v2098_v55  ;;  %v2178_v48 = vadd.f32 %v2142_v40, %v2141_v26 }
 0x424   : > { %v2034_v44 = vpop.f32.mrb[44].mxu0  ;;  %2176 = vadd.xlane.f32.xlu0 %v2175_v4 }
 0x425   : > { %v4364_v31 = vadd.f32 %v2034_v44, %v4281_v14  ;;  %v2036_v58 = vpop.f32.mrb[45].mxu0 }
 0x426   : > { %v4367_v35 = vadd.f32 %v2036_v58, %v4289_v34  ;;  %v2038_v11 = vpop.f32.mrb[46].mxu0  ;;  %2179 = vadd.xlane.f32.xlu1 %v2178_v48 }
 0x427   : > { %v4370_v32 = vadd.f32 %v2038_v11, %v4281_v14  ;;  %v2040_v9 = vpop.f32.mrb[47].mxu0  ;;  %v2143_v43 = vmul.f32 %v4364_v31, %v4364_v31 }
 0x428   : > { %v4373_v13 = vadd.f32 %v2040_v9, %v4289_v34  ;;  %v2101_v53 = vadd.f32 %v4367_v35, %v4364_v31  ;;  %v2144_v3 = vmul.f32 %v4367_v35, %v4367_v35 }
 0x429   : > { %v2145_v56 = vmul.f32 %v4370_v32, %v4370_v32 }
 0x42a   : > { %2102 = vadd.xlane.f32.xlu0 %v2101_v53  ;;  %v2104_v10 = vadd.f32 %v4373_v13, %v4370_v32  ;;  %v2146_v39 = vmul.f32 %v4373_v13, %v4373_v13  ;;  %v2181_v15 = vadd.f32 %v2144_v3, %v2143_v43 }
 0x42c   : > { %2105 = vadd.xlane.f32.xlu1 %v2104_v10  ;;  %v2184_v37 = vadd.f32 %v2146_v39, %v2145_v56 }
 0x42d   : > { %v2044_v1 = vpop.f32.mrb[48].mxu0 }
 0x42e   : > { %2182 = vadd.xlane.f32.xlu0 %v2181_v15  ;;  %v4388_v36 = vadd.f32 %v2044_v1, %v4281_v14  ;;  %v2046_v28 = vpop.f32.mrb[49].mxu0 }
 0x42f   : > { %v4391_v24 = vadd.f32 %v2046_v28, %v4289_v34  ;;  %v2048_v7 = vpop.f32.mrb[50].mxu0 }
 0x430   : > { %2185 = vadd.xlane.f32.xlu1 %v2184_v37  ;;  %v4394_v30 = vadd.f32 %v2048_v7, %v4281_v14  ;;  %v2050_v60 = vpop.f32.mrb[51].mxu0  ;;  %v2147_v23 = vmul.f32 %v4388_v36, %v4388_v36 }
 0x431   : > { %v4397_v5 = vadd.f32 %v2050_v60, %v4289_v34  ;;  %v2107_v51 = vadd.f32 %v4391_v24, %v4388_v36  ;;  %v2148_v45 = vmul.f32 %v4391_v24, %v4391_v24 }
 0x432   : > { %v2149_v27 = vmul.f32 %v4394_v30, %v4394_v30 }
 0x433   : > { %2108 = vadd.xlane.f32.xlu0 %v2107_v51  ;;  %v2110_v2 = vadd.f32 %v4397_v5, %v4394_v30  ;;  %v2150_v38 = vmul.f32 %v4397_v5, %v4397_v5  ;;  %v2187_v49 = vadd.f32 %v2148_v45, %v2147_v23 }
 0x435   : > { %2111 = vadd.xlane.f32.xlu1 %v2110_v2  ;;  %v2054_v17 = vpop.f32.mrb[52].mxu0  ;;  %v2190_v29 = vadd.f32 %v2150_v38, %v2149_v27 }
 0x436   : > { %v4412_v25 = vadd.f32 %v2054_v17, %v4281_v14  ;;  %v2056_v47 = vpop.f32.mrb[53].mxu0 }
 0x437   : > { %v4415_v18 = vadd.f32 %v2056_v47, %v4289_v34  ;;  %2188 = vadd.xlane.f32.xlu0 %v2187_v49  ;;  %v2058_v57 = vpop.f32.mrb[54].mxu0 }
 0x438   : > { %v4418_v8 = vadd.f32 %v2058_v57, %v4281_v14  ;;  %v2060_v62 = vpop.f32.mrb[55].mxu0  ;;  %v2151_v6 = vmul.f32 %v4412_v25, %v4412_v25 }
 0x439   : > { %v4421_v42 = vadd.f32 %v2060_v62, %v4289_v34  ;;  %2191 = vadd.xlane.f32.xlu1 %v2190_v29  ;;  %v2113_v33 = vadd.f32 %v4415_v18, %v4412_v25  ;;  %v2152_v55 = vmul.f32 %v4415_v18, %v4415_v18 }
 0x43a   : > { %v2153_v40 = vmul.f32 %v4418_v8, %v4418_v8 }
 0x43b   : > { %2114 = vadd.xlane.f32.xlu0 %v2113_v33  ;;  %v2116_v26 = vadd.f32 %v4421_v42, %v4418_v8  ;;  %v2154_v4 = vmul.f32 %v4421_v42, %v4421_v42  ;;  %v2193_v58 = vadd.f32 %v2152_v55, %v2151_v6 }
 0x43d   : > { %2117 = vadd.xlane.f32.xlu1 %v2116_v26  ;;  %v2064_v44 = vpop.f32.mrb[56].mxu0  ;;  %v2196_v43 = vadd.f32 %v2154_v4, %v2153_v40  ;;  %v4486_v26 = vld [vmem:[%s4739_s4 + $0x10] sm:$0xff]  ;;  %v228_v40 = vld [vmem:[%s4739_s4 + $0x18] sm:$0xff] }
 0x43e   : > { %v4436_v48 = vadd.f32 %v2064_v44, %v4281_v14  ;;  %v2066_v11 = vpop.f32.mrb[57].mxu0  ;;  %v2484_v4 = vpack.c.bf16 %v228_v40, %v228_v40 }
 0x43f   : > { %v4439_v9 = vadd.f32 %v2066_v11, %v4289_v34  ;;  %2194 = vadd.xlane.f32.xlu0 %v2193_v58  ;;  %v2068_v53 = vpop.f32.mrb[58].mxu0 }
 0x440   : > { %v4442_v3 = vadd.f32 %v2068_v53, %v4281_v14  ;;  %v2070_v10 = vpop.f32.mrb[59].mxu0  ;;  %v2155_v15 = vmul.f32 %v4436_v48, %v4436_v48  ;;  %v2509_v44 = vshrl.u32 %v2484_v4, 16 }
 0x441   : > { %v4445_v56 = vadd.f32 %v2070_v10, %v4289_v34  ;;  %2197 = vadd.xlane.f32.xlu1 %v2196_v43  ;;  %v2119_v39 = vadd.f32 %v4439_v9, %v4436_v48  ;;  %v2156_v1 = vmul.f32 %v4439_v9, %v4439_v9 }
 0x442   : > { %v2157_v28 = vmul.f32 %v4442_v3, %v4442_v3  ;;  %2547 = vmatprep.mubr.bf16.mxu0 %v2509_v44 }
 0x443   : > { %2120 = vadd.xlane.f32.xlu0 %v2119_v39  ;;  %v2122_v37 = vadd.f32 %v4445_v56, %v4442_v3  ;;  %v2158_v7 = vmul.f32 %v4445_v56, %v4445_v56  ;;  %v2199_v51 = vadd.f32 %v2156_v1, %v2155_v15 }
 0x445   : > { %2123 = vadd.xlane.f32.xlu1 %v2122_v37  ;;  %v2074_v60 = vpop.f32.mrb[60].mxu0  ;;  %v2202_v38 = vadd.f32 %v2158_v7, %v2157_v28 }
 0x446   : > { %v4460_v23 = vadd.f32 %v2074_v60, %v4281_v14  ;;  %v2076_v45 = vpop.f32.mrb[61].mxu0 }
 0x447   : > { %v4463_v2 = vadd.f32 %v2076_v45, %v4289_v34  ;;  %2200 = vadd.xlane.f32.xlu0 %v2199_v51  ;;  %v2078_v27 = vpop.f32.mrb[62].mxu0 }
 0x448   : > { %v4466_v17 = vadd.f32 %v2078_v27, %v4281_v14  ;;  %v2080_v49 = vpop.f32.mrb[63].mxu0  ;;  %v2159_v29 = vmul.f32 %v4460_v23, %v4460_v23 }
 0x449   : > { %v4469_v47 = vadd.f32 %v2080_v49, %v4289_v34  ;;  %2203 = vadd.xlane.f32.xlu1 %v2202_v38  ;;  %v2125_v57 = vadd.f32 %v4463_v2, %v4460_v23  ;;  %v2160_v62 = vmul.f32 %v4463_v2, %v4463_v2 }
 0x44a   : > { %v2161_v14 = vmul.f32 %v4466_v17, %v4466_v17 }
 0x44b   : > { %2126 = vadd.xlane.f32.xlu0 %v2125_v57  ;;  %v2128_v33 = vadd.f32 %v4469_v47, %v4466_v17  ;;  %v2162_v34 = vmul.f32 %v4469_v47, %v4469_v47  ;;  %v2205_v6 = vadd.f32 %v2160_v62, %v2159_v29 }
 0x44d   : > { %2129 = vadd.xlane.f32.xlu1 %v2128_v33  ;;  %v2208_v55 = vadd.f32 %v2162_v34, %v2161_v14  ;;  %v2373_v34 = vsub.s32 7, %v3283_v54 }
 0x44f   : > { %2206 = vadd.xlane.f32.xlu0 %v2205_v6 }
 0x451   : > { %2209 = vadd.xlane.f32.xlu1 %v2208_v55 }
 0x465   : > { %2503 = vperm.xlu0 %2795, %v4486_v26  }
 0x499   : > { %v2085_v58 = vpop.xlane.xlu0 %2084 }
 0x49a   : > { %v2211_v11 = vmul.f32 0.00390625, %v2085_v58 }
 0x49b   : > { %v2088_v53 = vpop.xlane.xlu1 %2087 }
 0x49c   : > { %v2212_v43 = vmul.f32 0.00390625, %v2088_v53  ;;  %v2243_v39 = vmul.f32 %v2211_v11, %v2211_v11  ;;  %v4502_v53 = vrot.slane %v4286_v63, %v2373_v34 }
 0x49d   : > { %v2165_v10 = vpop.xlane.xlu0 %2164 }
 0x49e   : > { %v2227_v15 = vmul.f32 0.00390625, %v2165_v10  ;;  %v2244_v28 = vmul.f32 %v2212_v43, %v2212_v43  ;;  %v4505_v10 = vrot.slane %v4278_v0, %v2373_v34  ;;  %v2310_v0 = vsub.f32 %v4301_v21, %v2212_v43 }
 0x49f   : > { %v2168_v1 = vpop.xlane.xlu1 %2167 }
 0x4a0   : > { %v2259_v37 = vsub.f32 %v2227_v15, %v2243_v39  ;;  %v2228_v7 = vmul.f32 0.00390625, %v2168_v1  ;;  %v2307_v39 = vsub.f32 %v4292_v16, %v2211_v11  ;;  %v2308_v15 = vsub.f32 %v4295_v41, %v2211_v11 }
 0x4a2   : > { %v2275_v60 = vadd.f32 1e-05, %v2259_v37  ;;  %v2260_v51 = vsub.f32 %v2228_v7, %v2244_v28  ;;  %v2091_v45 = vpop.xlane.xlu0 %2090  ;;  %v2309_v28 = vsub.f32 %v4298_v59, %v2212_v43 }
 0x4a3   : > { %v4492_v27 = vmul.f32 0.00390625, %v2091_v45 }
 0x4a4   : > { %2966 = vrsqrt.f32 %v2275_v60  ;;  %v2276_v38 = vadd.f32 1e-05, %v2260_v51  ;;  %v2094_v49 = vpop.xlane.xlu1 %2093  ;;  %v4749_v60 = vld [vmem:[#allocation5_spill] sm:$0xff] }
 0x4a5   : > { %v4494_v57 = vmul.f32 0.00390625, %v2094_v49  ;;  %v2245_v62 = vmul.f32 %v4492_v27, %v4492_v27  ;;  %v4513_v51 = vrot.slane %v228_v40, %v4749_v60  ;;  %v4517_v63 = vrot.slane %v4486_v26, %v4749_v60 }
 0x4a6   : > { %2968 = vrsqrt.f32 %v2276_v38  ;;  %v2171_v29 = vpop.xlane.xlu0 %2170 }
 0x4a7   : > { %v2229_v33 = vmul.f32 0.00390625, %v2171_v29  ;;  %v2246_v55 = vmul.f32 %v4494_v57, %v4494_v57 }
 0x4a8   : > { %v2174_v14 = vpop.xlane.xlu1 %2173 }
 0x4a9   : > { %v2261_v6 = vsub.f32 %v2229_v33, %v2245_v62  ;;  %v2230_v4 = vmul.f32 0.00390625, %v2174_v14 }
 0x4ab   : > { %v2277_v44 = vadd.f32 1e-05, %v2261_v6  ;;  %v2262_v58 = vsub.f32 %v2230_v4, %v2246_v55 }
 0x4ad   : > { %2970 = vrsqrt.f32 %v2277_v44  ;;  %v2278_v1 = vadd.f32 1e-05, %v2262_v58  ;;  %v2097_v54 = vpop.xlane.xlu0 %2096 }
 0x4ae   : > { %v2967_v37 = vpop.eup %2966  ;;  %v4510_v7 = vmul.f32 0.00390625, %v2097_v54 }
 0x4af   : > { %2972 = vrsqrt.f32 %v2278_v1  ;;  %v2100_v16 = vpop.xlane.xlu1 %2099  ;;  %v2340_v41 = vmul.f32 %v2967_v37, %v2308_v15  ;;  %v2339_v11 = vmul.f32 %v2967_v37, %v2307_v39  ;;  %v2311_v39 = vsub.f32 %v4316_v22, %v4492_v27 }
 0x4b0   : > { %v2969_v45 = vpop.eup %2968  ;;  %v4520_v38 = vmul.f32 0.00390625, %v2100_v16  ;;  %v2247_v33 = vmul.f32 %v4510_v7, %v4510_v7  ;;  %v2312_v15 = vsub.f32 %v4319_v50, %v4492_v27  ;;  %v2314_v37 = vsub.f32 %v4325_v52, %v4494_v57 }
 0x4b1   : > { %v2177_v49 = vpop.xlane.xlu0 %2176  ;;  %v2342_v59 = vmul.f32 %v2969_v45, %v2310_v0  ;;  %v2380_v29 = vmul.f32 %v4502_v53, %v2340_v41  ;;  %v2341_v62 = vmul.f32 %v2969_v45, %v2309_v28  ;;  %v2379_v40 = vmul.f32 %v4505_v10, %v2339_v11 }
 0x4b2   : > { %v2231_v14 = vmul.f32 0.00390625, %v2177_v49  ;;  %v2248_v44 = vmul.f32 %v4520_v38, %v4520_v38 }
 0x4b3   : > { %v2180_v34 = vpop.xlane.xlu1 %2179  ;;  %v2382_v21 = vmul.f32 %v4502_v53, %v2342_v59  ;;  %v2420_v43 = vadd.f32 %v4513_v51, %v2380_v29  ;;  %v2381_v6 = vmul.f32 %v4505_v10, %v2341_v62  ;;  %v2419_v55 = vadd.f32 %v4517_v63, %v2379_v40 }
 0x4b4   : > { %v2263_v4 = vsub.f32 %v2231_v14, %v2247_v33  ;;  %v2232_v58 = vmul.f32 0.00390625, %v2180_v34  ;;  %v2313_v40 = vsub.f32 %v4322_v19, %v4494_v57 }
 0x4b5   : > { %v2422_v1 = vadd.f32 %v4513_v51, %v2382_v21  ;;  %v2421_v54 = vadd.f32 %v4517_v63, %v2381_v6  ;;  %v2452_v16 = vmax.f32 %v2420_v43, 0.0  ;;  %v2451_v49 = vmax.f32 %v2419_v55, 0.0 }
 0x4b6   : > { %v2279_v28 = vadd.f32 1e-05, %v2263_v4  ;;  %v2264_v60 = vsub.f32 %v2232_v58, %v2248_v44 }
 0x4b7   : > { %v2103_v0 = vpop.xlane.xlu0 %2102  ;;  %v2971_v41 = vpop.eup %2970  ;;  %v2454_v45 = vmax.f32 %v2422_v1, 0.0  ;;  %v2453_v22 = vmax.f32 %v2421_v54, 0.0 }
 0x4b8   : > { %v4540_v11 = vmul.f32 0.00390625, %v2103_v0  ;;  %2974 = vrsqrt.f32 %v2279_v28  ;;  %v2280_v59 = vadd.f32 1e-05, %v2264_v60  ;;  %v2344_v27 = vmul.f32 %v2971_v41, %v2312_v15 }
 0x4b9   : > { %v2106_v50 = vpop.xlane.xlu1 %2105  ;;  %v2343_v29 = vmul.f32 %v2971_v41, %v2311_v39  ;;  %v2973_v62 = vpop.eup %2972  ;;  %v2486_v14 = vpack.c.bf16 %v2454_v45, %v2452_v16  ;;  %v2485_v34 = vpack.c.bf16 %v2453_v22, %v2451_v49  ;;  %v2315_v22 = vsub.f32 %v4340_v46, %v4510_v7 }
 0x4ba   : > { %v4544_v52 = vmul.f32 0.00390625, %v2106_v50  ;;  %2976 = vrsqrt.f32 %v2280_v59  ;;  %v2346_v21 = vmul.f32 %v2973_v62, %v2314_v37  ;;  %v2249_v43 = vmul.f32 %v4540_v11, %v4540_v11 }
 0x4bb   : > { %v2183_v33 = vpop.xlane.xlu0 %2182  ;;  %2515 = vmatprep.subr.bf16.mxu0 %v2486_v14  ;;  %v2384_v4 = vmul.f32 %v4502_v53, %v2344_v27  ;;  %v2345_v58 = vmul.f32 %v2973_v62, %v2313_v40  ;;  %v2383_v19 = vmul.f32 %v4505_v10, %v2343_v29  ;;  %v2316_v29 = vsub.f32 %v4343_v12, %v4510_v7 }
 0x4bc   : > { %v2233_v6 = vmul.f32 0.00390625, %v2183_v33  ;;  %v2386_v44 = vmul.f32 %v4502_v53, %v2346_v21  ;;  %v2250_v39 = vmul.f32 %v4544_v52, %v4544_v52  ;;  %2516 = vmatpush1.bf16.xpose.msra.mxu0 %v2485_v34  ;;  %v2317_v34 = vsub.f32 %v4346_v61, %v4520_v38 }
 0x4bd   : > { %v2186_v55 = vpop.xlane.xlu1 %2185  ;;  %v2424_v1 = vadd.f32 %v4513_v51, %v2384_v4  ;;  %v2385_v37 = vmul.f32 %v4505_v10, %v2345_v58  ;;  %v2423_v28 = vadd.f32 %v4517_v63, %v2383_v19  ;;  %v2318_v46 = vsub.f32 %v4349_v20, %v4520_v38 }
 0x4be   : > { %v2265_v57 = vsub.f32 %v2233_v6, %v2249_v43  ;;  %v2234_v15 = vmul.f32 0.00390625, %v2186_v55  ;;  %v2426_v54 = vadd.f32 %v4513_v51, %v2386_v44 }
 0x4bf   : > { %v2456_v41 = vmax.f32 %v2424_v1, 0.0  ;;  %v2425_v49 = vadd.f32 %v4517_v63, %v2385_v37  ;;  %v2455_v33 = vmax.f32 %v2423_v28, 0.0 }
 0x4c0   : > { %v2281_v60 = vadd.f32 1e-05, %v2265_v57  ;;  %v2266_v0 = vsub.f32 %v2234_v15, %v2250_v39  ;;  %v2109_v16 = vpop.xlane.xlu0 %2108  ;;  %v2458_v45 = vmax.f32 %v2426_v54, 0.0 }
 0x4c1   : > { %v4560_v50 = vmul.f32 0.00390625, %v2109_v16  ;;  %v2457_v14 = vmax.f32 %v2425_v49, 0.0  ;;  %v2320_v49 = vsub.f32 %v4367_v35, %v4540_v11 }
 0x4c2   : > { %2978 = vrsqrt.f32 %v2281_v60  ;;  %v2282_v59 = vadd.f32 1e-05, %v2266_v0  ;;  %v2975_v27 = vpop.eup %2974  ;;  %v2112_v62 = vpop.xlane.xlu1 %2111  ;;  %v2488_v40 = vpack.c.bf16 %v2458_v45, %v2456_v41  ;;  %v2319_v0 = vsub.f32 %v4364_v31, %v4540_v11 }
 0x4c3   : > { %v4566_v21 = vmul.f32 0.00390625, %v2112_v62  ;;  %v2487_v55 = vpack.c.bf16 %v2457_v14, %v2455_v33  ;;  %v2348_v4 = vmul.f32 %v2975_v27, %v2316_v29  ;;  %v2347_v44 = vmul.f32 %v2975_v27, %v2315_v22 }
 0x4c4   : > { %2980 = vrsqrt.f32 %v2282_v59  ;;  %v2977_v43 = vpop.eup %2976  ;;  %v2189_v6 = vpop.xlane.xlu0 %2188  ;;  %2517 = vmatprep.subr.bf16.mxu0 %v2488_v40  ;;  %v2251_v12 = vmul.f32 %v4560_v50, %v4560_v50  ;;  %v2322_v22 = vsub.f32 %v4373_v13, %v4544_v52 }
 0x4c5   : > { %v2235_v7 = vmul.f32 0.00390625, %v2189_v6  ;;  %2518 = vmatpush1.bf16.xpose.msra.mxu0 %v2487_v55  ;;  %v2350_v19 = vmul.f32 %v2977_v43, %v2318_v46  ;;  %v2388_v61 = vmul.f32 %v4502_v53, %v2348_v4  ;;  %v2349_v57 = vmul.f32 %v2977_v43, %v2317_v34 }
 0x4c6   : > { %v2192_v58 = vpop.xlane.xlu1 %2191  ;;  %v2387_v39 = vmul.f32 %v4505_v10, %v2347_v44  ;;  %v2252_v20 = vmul.f32 %v4566_v21, %v4566_v21  ;;  %v2321_v4 = vsub.f32 %v4370_v32, %v4544_v52 }
 0x4c7   : > { %v2267_v15 = vsub.f32 %v2235_v7, %v2251_v12  ;;  %v2236_v38 = vmul.f32 0.00390625, %v2192_v58  ;;  %v2390_v54 = vmul.f32 %v4502_v53, %v2350_v19  ;;  %v2428_v37 = vadd.f32 %v4513_v51, %v2388_v61 }
 0x4c8   : > { %v2115_v1 = vpop.xlane.xlu0 %2114  ;;  %v2389_v28 = vmul.f32 %v4505_v10, %v2349_v57  ;;  %v2427_v60 = vadd.f32 %v4517_v63, %v2387_v39 }
 0x4c9   : > { %v2283_v16 = vadd.f32 1e-05, %v2267_v15  ;;  %v2268_v41 = vsub.f32 %v2236_v38, %v2252_v20  ;;  %v4582_v45 = vmul.f32 0.00390625, %v2115_v1  ;;  %v2430_v27 = vadd.f32 %v4513_v51, %v2390_v54 }
 0x4ca   : > { %v2118_v59 = vpop.xlane.xlu1 %2117  ;;  %v2429_v29 = vadd.f32 %v4517_v63, %v2389_v28  ;;  %v2460_v33 = vmax.f32 %v2428_v37, 0.0  ;;  %v2459_v31 = vmax.f32 %v2427_v60, 0.0 }
 0x4cb   : > { %2982 = vrsqrt.f32 %v2283_v16  ;;  %v2284_v40 = vadd.f32 1e-05, %v2268_v41  ;;  %v4590_v14 = vmul.f32 0.00390625, %v2118_v59  ;;  %v2253_v34 = vmul.f32 %v4582_v45, %v4582_v45 }
 0x4cc   : > { %v2979_v62 = vpop.eup %2978  ;;  %v2195_v43 = vpop.xlane.xlu0 %2194  ;;  %v2462_v35 = vmax.f32 %v2430_v27, 0.0  ;;  %v2461_v11 = vmax.f32 %v2429_v29, 0.0  ;;  %v2323_v16 = vsub.f32 %v4388_v36, %v4560_v50  ;;  %v2324_v41 = vsub.f32 %v4391_v24, %v4560_v50 }
 0x4cd   : > { %2984 = vrsqrt.f32 %v2284_v40  ;;  %v2237_v13 = vmul.f32 0.00390625, %v2195_v43  ;;  %v2352_v6 = vmul.f32 %v2979_v62, %v2320_v49  ;;  %v2351_v55 = vmul.f32 %v2979_v62, %v2319_v0 }
 0x4ce   : > { %v2981_v46 = vpop.eup %2980  ;;  %v2254_v44 = vmul.f32 %v4590_v14, %v4590_v14  ;;  %v2198_v12 = vpop.xlane.xlu1 %2197  ;;  %v2490_v7 = vpack.c.bf16 %v2462_v35, %v2460_v33  ;;  %v2489_v61 = vpack.c.bf16 %v2461_v11, %v2459_v31  ;;  %v2326_v59 = vsub.f32 %v4397_v5, %v4566_v21 }
 0x4cf   : > { %v2269_v58 = vsub.f32 %v2237_v13, %v2253_v34  ;;  %v2238_v19 = vmul.f32 0.00390625, %v2198_v12  ;;  %v2354_v57 = vmul.f32 %v2981_v46, %v2322_v22  ;;  %v2392_v15 = vmul.f32 %v4502_v53, %v2352_v6 }
 0x4d0   : > { %v2121_v39 = vpop.xlane.xlu0 %2120  ;;  %2519 = vmatprep.subr.bf16.mxu0 %v2490_v7  ;;  %v2353_v20 = vmul.f32 %v2981_v46, %v2321_v4  ;;  %v2391_v38 = vmul.f32 %v4505_v10, %v2351_v55  ;;  %v2325_v22 = vsub.f32 %v4394_v30, %v4566_v21 }
 0x4d1   : > { %v2285_v1 = vadd.f32 1e-05, %v2269_v58  ;;  %v2270_v54 = vsub.f32 %v2238_v19, %v2254_v44  ;;  %v4600_v37 = vmul.f32 0.00390625, %v2121_v39  ;;  %2520 = vmatpush1.bf16.xpose.msra.mxu0 %v2489_v61  ;;  %v2394_v32 = vmul.f32 %v4502_v53, %v2354_v57 }
 0x4d2   : > { %v2124_v52 = vpop.xlane.xlu1 %2123  ;;  %v2432_v28 = vadd.f32 %v4513_v51, %v2392_v15  ;;  %v2393_v60 = vmul.f32 %v4505_v10, %v2353_v20  ;;  %v2431_v0 = vadd.f32 %v4517_v63, %v2391_v38  ;;  %v2327_v38 = vsub.f32 %v4412_v25, %v4582_v45 }
 0x4d3   : > { %2986 = vrsqrt.f32 %v2285_v1  ;;  %v2286_v49 = vadd.f32 1e-05, %v2270_v54  ;;  %v4614_v27 = vmul.f32 0.00390625, %v2124_v52  ;;  %v2434_v62 = vadd.f32 %v4513_v51, %v2394_v32 }
 0x4d4   : > { %v2201_v29 = vpop.xlane.xlu0 %2200  ;;  %v2255_v36 = vmul.f32 %v4600_v37, %v4600_v37  ;;  %v2433_v24 = vadd.f32 %v4517_v63, %v2393_v60  ;;  %v2464_v31 = vmax.f32 %v2432_v28, 0.0  ;;  %v2463_v5 = vmax.f32 %v2431_v0, 0.0 }
 0x4d5   : > { %v2983_v40 = vpop.eup %2982  ;;  %2988 = vrsqrt.f32 %v2286_v49  ;;  %v2239_v33 = vmul.f32 0.00390625, %v2201_v29  ;;  %v2256_v50 = vmul.f32 %v4614_v27, %v4614_v27  ;;  %v2466_v34 = vmax.f32 %v2434_v62, 0.0 }
 0x4d6   : > { %v2204_v30 = vpop.xlane.xlu1 %2203  ;;  %v2465_v11 = vmax.f32 %v2433_v24, 0.0  ;;  %v2356_v46 = vmul.f32 %v2983_v40, %v2324_v41  ;;  %v2355_v4 = vmul.f32 %v2983_v40, %v2323_v16  ;;  %v2328_v1 = vsub.f32 %v4415_v18, %v4582_v45 }
 0x4d7   : > { %v2985_v21 = vpop.eup %2984  ;;  %v2271_v43 = vsub.f32 %v2239_v33, %v2255_v36  ;;  %v2240_v35 = vmul.f32 0.00390625, %v2204_v30  ;;  %v2492_v6 = vpack.c.bf16 %v2466_v34, %v2464_v31  ;;  %v2329_v45 = vsub.f32 %v4418_v8, %v4590_v14 }
 0x4d8   : > { %v2127_v13 = vpop.xlane.xlu0 %2126  ;;  %v2358_v55 = vmul.f32 %v2985_v21, %v2326_v59  ;;  %v2357_v44 = vmul.f32 %v2985_v21, %v2325_v22  ;;  %v2491_v19 = vpack.c.bf16 %v2465_v11, %v2463_v5  ;;  %v2396_v57 = vmul.f32 %v4502_v53, %v2356_v46 }
 0x4d9   : > { %v2287_v12 = vadd.f32 1e-05, %v2271_v43  ;;  %v2272_v7 = vsub.f32 %v2240_v35, %v2256_v50  ;;  %v4622_v58 = vmul.f32 0.00390625, %v2127_v13  ;;  %2521 = vmatprep.subr.bf16.mxu0 %v2492_v6  ;;  %v2395_v15 = vmul.f32 %v4505_v10, %v2355_v4 }
 0x4da   : > { %v2130_v61 = vpop.xlane.xlu1 %2129  ;;  %v2398_v39 = vmul.f32 %v4502_v53, %v2358_v55  ;;  %v2397_v20 = vmul.f32 %v4505_v10, %v2357_v44  ;;  %2522 = vmatpush1.bf16.xpose.msra.mxu0 %v2491_v19  ;;  %v2436_v60 = vadd.f32 %v4513_v51, %v2396_v57  ;;  %v2330_v49 = vsub.f32 %v4421_v42, %v4590_v14 }
 0x4db   : > { %2990 = vrsqrt.f32 %v2287_v12  ;;  %v2288_v54 = vadd.f32 1e-05, %v2272_v7  ;;  %v4632_v32 = vmul.f32 0.00390625, %v2130_v61  ;;  %v2257_v52 = vmul.f32 %v4622_v58, %v4622_v58 }
 0x4dc   : > { %v2207_v28 = vpop.xlane.xlu0 %2206  ;;  %v2438_v0 = vadd.f32 %v4513_v51, %v2398_v39  ;;  %v2435_v25 = vadd.f32 %v4517_v63, %v2395_v15  ;;  %v2437_v18 = vadd.f32 %v4517_v63, %v2397_v20  ;;  %v2468_v29 = vmax.f32 %v2436_v60, 0.0 }
 0x4dd   : > { %v2987_v16 = vpop.eup %2986  ;;  %2992 = vrsqrt.f32 %v2288_v54  ;;  %v2241_v41 = vmul.f32 0.00390625, %v2207_v28  ;;  %v2258_v22 = vmul.f32 %v4632_v32, %v4632_v32  ;;  %v2332_v6 = vsub.f32 %v4439_v9, %v4600_v37 }
 0x4de   : > { %v2210_v59 = vpop.xlane.xlu1 %2209  ;;  %v2470_v33 = vmax.f32 %v2438_v0, 0.0  ;;  %v2467_v24 = vmax.f32 %v2435_v25, 0.0  ;;  %v2469_v50 = vmax.f32 %v2437_v18, 0.0  ;;  %v2360_v30 = vmul.f32 %v2987_v16, %v2328_v1 }
 0x4df   : > { %v2989_v62 = vpop.eup %2988  ;;  %v2273_v40 = vsub.f32 %v2241_v41, %v2257_v52  ;;  %v2242_v36 = vmul.f32 0.00390625, %v2210_v59  ;;  %v2359_v34 = vmul.f32 %v2987_v16, %v2327_v38  ;;  %v2331_v7 = vsub.f32 %v4436_v48, %v4600_v37 }
 0x4e0   : > { %v2362_v31 = vmul.f32 %v2989_v62, %v2330_v49  ;;  %v2494_v8 = vpack.c.bf16 %v2470_v33, %v2468_v29  ;;  %v2361_v43 = vmul.f32 %v2989_v62, %v2329_v45  ;;  %v2493_v35 = vpack.c.bf16 %v2469_v50, %v2467_v24 }
 0x4e1   : > { %v2289_v5 = vadd.f32 1e-05, %v2273_v40  ;;  %v2274_v21 = vsub.f32 %v2242_v36, %v2258_v22  ;;  %v2400_v42 = vmul.f32 %v4502_v53, %v2360_v30  ;;  %v2399_v11 = vmul.f32 %v4505_v10, %v2359_v34 }
 0x4e2   : > { %v2402_v14 = vmul.f32 %v4502_v53, %v2362_v31  ;;  %2523 = vmatprep.subr.bf16.mxu0 %v2494_v8  ;;  %v2401_v13 = vmul.f32 %v4505_v10, %v2361_v43  ;;  %v2333_v19 = vsub.f32 %v4442_v3, %v4614_v27  ;;  %v2334_v9 = vsub.f32 %v4445_v56, %v4614_v27 }
 0x4e3   : > { %2994 = vrsqrt.f32 %v2289_v5  ;;  %v2290_v46 = vadd.f32 1e-05, %v2274_v21  ;;  %2524 = vmatpush1.bf16.xpose.msra.mxu0 %v2493_v35  ;;  %v2440_v55 = vadd.f32 %v4513_v51, %v2400_v42  ;;  %v2439_v44 = vadd.f32 %v4517_v63, %v2399_v11 }
 0x4e4   : > { %v2442_v4 = vadd.f32 %v4513_v51, %v2402_v14  ;;  %v2441_v61 = vadd.f32 %v4517_v63, %v2401_v13  ;;  %v2335_v41 = vsub.f32 %v4460_v23, %v4622_v58  ;;  %v2336_v25 = vsub.f32 %v4463_v2, %v4622_v58  ;;  %v2504_v13 = vpop.permute.xlu0 %2503 }
 0x4e5   : > { %v2991_v12 = vpop.eup %2990  ;;  %2996 = vrsqrt.f32 %v2290_v46  ;;  %v2472_v57 = vmax.f32 %v2440_v55, 0.0  ;;  %v2471_v38 = vmax.f32 %v2439_v44, 0.0  ;;  %v2337_v22 = vsub.f32 %v4466_v17, %v4632_v32 }
 0x4e6   : > { %v2474_v39 = vmax.f32 %v2442_v4, 0.0  ;;  %v2364_v15 = vmul.f32 %v2991_v12, %v2332_v6  ;;  %v2473_v1 = vmax.f32 %v2441_v61, 0.0  ;;  %v2363_v54 = vmul.f32 %v2991_v12, %v2331_v7 }
 0x4e7   : > { %v2993_v20 = vpop.eup %2992  ;;  %v2338_v59 = vsub.f32 %v4469_v47, %v4632_v32 }
 0x4e8   : > { %v2496_v52 = vpack.c.bf16 %v2474_v39, %v2472_v57  ;;  %v2366_v28 = vmul.f32 %v2993_v20, %v2334_v9  ;;  %v2404_v48 = vmul.f32 %v4502_v53, %v2364_v15  ;;  %v2365_v37 = vmul.f32 %v2993_v20, %v2333_v19 }
 0x4e9   : > { %v2495_v60 = vpack.c.bf16 %v2473_v1, %v2471_v38  ;;  %v2403_v3 = vmul.f32 %v4505_v10, %v2363_v54 }
 0x4ea   : > { %2525 = vmatprep.subr.bf16.mxu0 %v2496_v52  ;;  %v2406_v0 = vmul.f32 %v4502_v53, %v2366_v28  ;;  %v2444_v56 = vadd.f32 %v4513_v51, %v2404_v48  ;;  %v2405_v27 = vmul.f32 %v4505_v10, %v2365_v37 }
 0x4eb   : > { %v2443_v16 = vadd.f32 %v4517_v63, %v2403_v3  ;;  %2526 = vmatpush1.bf16.xpose.msra.mxu0 %v2495_v60 }
 0x4ec   : > { %v2446_v18 = vadd.f32 %v4513_v51, %v2406_v0  ;;  %v2445_v45 = vadd.f32 %v4517_v63, %v2405_v27  ;;  %v2476_v29 = vmax.f32 %v2444_v56, 0.0 }
 0x4ed   : > { %v2995_v49 = vpop.eup %2994  ;;  %v2475_v62 = vmax.f32 %v2443_v16, 0.0 }
 0x4ee   : > { %v2478_v40 = vmax.f32 %v2446_v18, 0.0  ;;  %v2477_v36 = vmax.f32 %v2445_v45, 0.0  ;;  %v2368_v23 = vmul.f32 %v2995_v49, %v2336_v25  ;;  %v2367_v33 = vmul.f32 %v2995_v49, %v2335_v41 }
 0x4ef   : > { %v2997_v24 = vpop.eup %2996 }
 0x4f0   : > { %v2369_v2 = vmul.f32 %v2997_v24, %v2337_v22  ;;  %v2498_v58 = vpack.c.bf16 %v2478_v40, %v2476_v29  ;;  %v2497_v50 = vpack.c.bf16 %v2477_v36, %v2475_v62  ;;  %v2370_v30 = vmul.f32 %v2997_v24, %v2338_v59 }
 0x4f1   : > { %v2408_v31 = vmul.f32 %v4502_v53, %v2368_v23  ;;  %v2407_v34 = vmul.f32 %v4505_v10, %v2367_v33 }
 0x4f2   : > { %2527 = vmatprep.subr.bf16.mxu0 %v2498_v58  ;;  %v2410_v17 = vmul.f32 %v4502_v53, %v2370_v30  ;;  %v2409_v47 = vmul.f32 %v4505_v10, %v2369_v2  ;;  %v2483_v53 = vpack.c.bf16 %v4486_v26, %v4486_v26 }
 0x4f3   : > { %v2448_v32 = vadd.f32 %v4513_v51, %v2408_v31  ;;  %v2447_v5 = vadd.f32 %v4517_v63, %v2407_v34  ;;  %2528 = vmatpush1.bf16.xpose.msra.mxu0 %v2497_v50 }
 0x4f4   : > { %v2450_v21 = vadd.f32 %v4513_v51, %v2410_v17  ;;  %v2449_v8 = vadd.f32 %v4517_v63, %v2409_v47  ;;  %v2506_v10 = vshrl.u32 %v2483_v53, 16  ;;  %v2513_v51 = vrot.slane %v2504_v13, 2 }
 0x4f5   : > { %v2480_v43 = vmax.f32 %v2448_v32, 0.0  ;;  %v2479_v42 = vmax.f32 %v2447_v5, 0.0 }
 0x4f6   : > { %v2482_v35 = vmax.f32 %v2450_v21, 0.0  ;;  %v2481_v14 = vmax.f32 %v2449_v8, 0.0 }
 0x4f8   : > { %v2500_v11 = vpack.c.bf16 %v2482_v35, %v2480_v43  ;;  %v2499_v46 = vpack.c.bf16 %v2481_v14, %v2479_v42 }
 0x4fa   : > { %2529 = vmatprep.subr.bf16.mxu0 %v2500_v11 }
 0x4fb   : > { %2530 = vmatpush1.bf16.xpose.msra.mxu0 %v2499_v46 }
 0x502   : > { %2548 = vmatmul.mubr.bf16.vlgmr.msra.gmra.mrb[64].mxu0 %v2506_v10 }
 0x5d5   : > { %v2549_v63 = vpop.f32.mrb[64].mxu0 }
 0x5d6   : > { %v2550_v6 = vadd.f32 %v2549_v63, %v2513_v51  ;;  %v2551_v55 = vpop.f32.mrb[65].mxu0 }
 0x5d7   : > { %v2552_v26 = vpop.f32.mrb[66].mxu0 }
 0x5d8   : > { %2555 = vst [vmem:[%s217_s7] sm:$0x1] %v2550_v6  ;;  %v2553_v4 = vpop.f32.mrb[67].mxu0 }
 0x5d9   : > { %3015 = shalt.err (!%p3012_p3)
}
 0x5da   : > { %s3016_s11 = scalar_lea.hbm %s4693_s12, 16  ;;  %s3020_s25 = scalar_lea.hbm %s4740_s5, 64 }
 0x5db   : > { %p3017_p4 = scmp.ne.s32.totalorder %s4693_s12, %s3016_s11  ;;  %p3021_p9 = scmp.lt.u32.totalorder %s4693_s12, %s4740_s5 }
 0x5dc   : > { %p3022_p10 = scmp.lt.u32.totalorder %s3020_s25, %s3016_s11  ;;  %p3024_p12 = scmp.lt.u32.totalorder %s3016_s11, %s4693_s12 }
 0x5dd   : > { %p3018_p7 = pnand %p3017_p4, %p3133_p5 }
 0x5de   : > { %p3023_p11 = por %p3022_p10, %p3021_p9 }
 0x5df   : > { %p3019_p8 = pneg %p3018_p7 }
 0x5e0   : > { %p3025_p13 = por %p3024_p12, %p3023_p11 }
 0x5e2   : > { %p3026_p0 = pnand %p3025_p13, %p3019_p8 }
 0x5e4   : > { %3029 = shalt.err (!%p3026_p0)
}
 0x5e5   : > { %2755 = dma.vmem_to_hbm [thread:$0]  (%p3133_p5), %s4695_s8, 16, %s4693_s12, %s2557_s13  }
 0x5e6 PF: > { %p2761_p1 = scmp.ge.s32.totalorder %s3064_s21, 2  ;;  %s2581_s6 = sand.u32 1, %s3052_s18  }
 0x5e7   : > { %s2582_s7 = scalar_lea.sflag [#allocation3], %s2581_s6 }
 0x5e8   : > { %p2758_p2 = pnand %p2761_p1, %p3137_p6 }
 0x5ea   : > { %3047 = dma.done.wait (!%p2758_p2), %s2582_s7, 16  }
 0x5eb   : > { %3049 = vsyncadd (!%p2758_p2), %s2582_s7, 4294967280  ;;  %p15_p3 = scmp.ge.s32.totalorder %s3121_s24, 6   ;;  %s4750_s18 = smov %s3056_s19 }
 0x5ec   : > { %s4751_s19 = smov %s3060_s20  ;;  %s4752_s20 = smov %s3131_s27 }
 0x5ed   : > { %s4753_s21 = smov %s3121_s24  ;;  %17 = sbr.rel (!%p15_p3) target bundleno = 3 (0x3), region = 75 }
 0x5f4   :  { %2586 = vsyncpa [#allocation3], 1 }
 0x5f5   :  { %2588 = vsyncpa [#allocation3 + $0x1], 1 }

</bundles_post_ra>
